<compile_context>
chip_gen: v7x
topology: tpu7x:2x2x1
jax: 0.10.0
libtpu: 0.0.40
codegen_flags: <defaults>
</compile_context>

<pallas_src>
import math
import functools

import jax
import jax.numpy as jnp
import numpy as np
from jax.experimental import pallas as pl
from jax.experimental.pallas import tpu as pltpu  # noqa: F401  (TPU backend knobs if needed)

# ----------------------------- hyperparameters -----------------------------
VOCAB = 50
D_MODEL = 32
N_HEADS = 4
D_FF = 64
N_LAYERS = 2
BATCH = 2
SEQ = 8
LN_EPS = 1e-5


# ------------------------------ Pallas kernel ------------------------------
def encoder_kernel(tok_col_ref, tok_row_ref, emb_ref, pe_ref,
                   wq_ref, wk_ref, wv_ref, wfc_ref,
                   ln1g_ref, ln1b_ref, w1_ref, w2_ref, ln2g_ref, ln2b_ref,
                   o_ref, *, n_heads, n_layers, batch, seq):
    """Whole encoder (embedding + positional encoding + pad mask + all layers)
    in one grid-less pallas_call.  Everything is VMEM-resident (<100 KB)."""
    f32 = jnp.float32
    bs, d_model = o_ref.shape
    vocab = emb_ref.shape[0]
    dk = d_model // n_heads

    # --- embedding gather as one-hot MXU matmul + positional encoding add ---
    tok_col = tok_col_ref[...]                                         # (B*S, 1) i32
    vocab_iota = jax.lax.broadcasted_iota(jnp.int32, (bs, vocab), 1)   # (B*S, V)
    onehot = (tok_col == vocab_iota).astype(f32)
    x = jnp.dot(onehot, emb_ref[...], preferred_element_type=f32)      # (B*S, D)
    x = x + jnp.concatenate([pe_ref[...]] * batch, axis=0)             # add PE per row

    # --- key-pad information: only (B, S) of data, broadcast in-register ---
    tok_row = tok_row_ref[...]                                         # (B, S) i32

    def layer_norm(h, g, b):
        mu = jnp.mean(h, axis=-1, keepdims=True)
        var = jnp.mean((h - mu) ** 2, axis=-1, keepdims=True)
        return (h - mu) * jax.lax.rsqrt(var + LN_EPS) * g + b

    for l in range(n_layers):                      # static unroll, n_layers == 2
        wfc = wfc_ref[l]
        # 1/sqrt(dk) is pre-folded into W_Q on the host.
        q = jnp.dot(x, wq_ref[l], preferred_element_type=f32)          # (B*S, D)
        k = jnp.dot(x, wk_ref[l], preferred_element_type=f32)
        v = jnp.dot(x, wv_ref[l], preferred_element_type=f32)

        mha_parts = []
        for b in range(batch):                     # static unroll, batch == 2
            r0 = b * seq

            def split_heads(m):                    # (B*S, D) -> (H, S, dk)
                return jnp.stack(
                    [m[r0:r0 + seq, h * dk:(h + 1) * dk] for h in range(n_heads)],
                    axis=0)

            qh, kh, vh = split_heads(q), split_heads(k), split_heads(v)
            # head-batched contraction over dk: no explicit kh.T transpose
            sc = jnp.einsum('hqd,hkd->hqk', qh, kh,
                            preferred_element_type=f32)                # (H, S, S)
            key_tok = tok_row[b:b + 1, :][None, :, :]                  # (1, 1, S) i32
            sc = jnp.where(key_tok == 0, f32(-1e9), sc)                # mask pad keys
            sc = sc - jnp.max(sc, axis=-1, keepdims=True)
            e = jnp.exp(sc)
            inv_denom = pl.reciprocal(jnp.sum(e, axis=-1, keepdims=True), approx=True)
            attn = e * inv_denom
            ctx = jnp.einsum('hqk,hkd->hqd', attn, vh,
                             preferred_element_type=f32)               # (H, S, dk)
            # output projection accumulated per head -> no lane concatenate
            mo = jnp.zeros((seq, d_model), f32)
            for h in range(n_heads):
                mo = mo + jnp.dot(ctx[h], wfc[h * dk:(h + 1) * dk, :],
                                  preferred_element_type=f32)
            mha_parts.append(mo)
        mha = jnp.concatenate(mha_parts, axis=0)                       # (B*S, D)

        h1 = layer_norm(mha + x, ln1g_ref[l], ln1b_ref[l])

        f = jnp.maximum(jnp.dot(h1, w1_ref[l], preferred_element_type=f32), 0.0)
        f = jnp.dot(f, w2_ref[l], preferred_element_type=f32)
        x = layer_norm(f + h1, ln2g_ref[l], ln2b_ref[l])

    o_ref[...] = x.astype(o_ref.dtype)


# ------------------------------ wrappers ------------------------------------
def prepare_kernel_params(params):
    """Host-side, once: stack per-layer weights along a leading layer axis and
    fold 1/sqrt(dk) into W_Q."""
    scale = 1.0 / math.sqrt(D_MODEL // N_HEADS)

    def stack(name):
        return jnp.stack([lp[name] for lp in params["layers"]], axis=0)

    return {
        "emb": params["emb"],
        "wq": stack("wq") * scale,
        "wk": stack("wk"), "wv": stack("wv"), "wfc": stack("wfc"),
        "ln1_g": stack("ln1_g"), "ln1_b": stack("ln1_b"),
        "w1": stack("w1"), "w2": stack("w2"),
        "ln2_g": stack("ln2_g"), "ln2_b": stack("ln2_b"),
    }


def encoder_forward(token_ids, kp, pe_table):
    """Fused encoder forward: single pallas_call, no grid.  Returns (B, S, D)."""
    B, S = token_ids.shape
    tok_col = token_ids.reshape(B * S, 1).astype(jnp.int32)   # for one-hot gather
    tok_row = token_ids.astype(jnp.int32)                     # for pad mask
    out = pl.pallas_call(
        functools.partial(encoder_kernel, n_heads=N_HEADS, n_layers=N_LAYERS,
                          batch=B, seq=S),
        out_shape=jax.ShapeDtypeStruct((B * S, D_MODEL), jnp.float32),
    )(tok_col, tok_row, kp["emb"], pe_table[:S],
      kp["wq"], kp["wk"], kp["wv"], kp["wfc"],
      kp["ln1_g"], kp["ln1_b"], kp["w1"], kp["w2"], kp["ln2_g"], kp["ln2_b"])
    return out.reshape(B, S, D_MODEL)


# ------------------------------ glue (plain JAX) ----------------------------
def positional_encoding_table(max_len, d_model):
    position = np.arange(max_len, dtype=np.float32)[:, None]
    div_term = np.exp(np.arange(0, d_model, 2, dtype=np.float32) / d_model
                      * -math.log(10000.0))
    pe = np.zeros((max_len, d_model), dtype=np.float32)
    pe[:, 0::2] = np.sin(position * div_term)
    pe[:, 1::2] = np.cos(position * div_term)
    return jnp.asarray(pe)


def get_attn_pad_mask(token_ids):
    B, S = token_ids.shape
    pad = (token_ids == 0).astype(jnp.float32)
    return jnp.broadcast_to(pad[:, None, :], (B, S, S))


def init_params(key):
    def lin(key, din, dout):
        return 0.02 * jax.random.normal(key, (din, dout), dtype=jnp.float32)

    keys = jax.random.split(key, 1 + 6 * N_LAYERS)
    params = {"emb": 0.02 * jax.random.normal(keys[0], (VOCAB, D_MODEL),
                                              dtype=jnp.float32)}
    layers = []
    for l in range(N_LAYERS):
        k = keys[1 + 6 * l: 1 + 6 * (l + 1)]
        layers.append({
            "wq": lin(k[0], D_MODEL, D_MODEL),
            "wk": lin(k[1], D_MODEL, D_MODEL),
            "wv": lin(k[2], D_MODEL, D_MODEL),
            "wfc": lin(k[3], D_MODEL, D_MODEL),
            "ln1_g": jnp.ones((1, D_MODEL), jnp.float32),
            "ln1_b": jnp.zeros((1, D_MODEL), jnp.float32),
            "w1": lin(k[4], D_MODEL, D_FF),
            "w2": lin(k[5], D_FF, D_MODEL),
            "ln2_g": jnp.ones((1, D_MODEL), jnp.float32),
            "ln2_b": jnp.zeros((1, D_MODEL), jnp.float32),
        })
    params["layers"] = layers
    return params


# ------------------------------ pure-JAX reference --------------------------
def encoder_forward_ref(token_ids, params, pe_table):
    # TODO(synk): dropout (p=0.1 pos-enc, p=0.0 encoder) treated as eval-mode identity.
    x = jnp.take(params["emb"], token_ids, axis=0)
    x = x + pe_table[None, :token_ids.shape[1], :]
    mask = get_attn_pad_mask(token_ids)
    dk = D_MODEL // N_HEADS
    for lp in params["layers"]:
        B, S, D = x.shape
        q = (x @ lp["wq"]).reshape(B, S, N_HEADS, dk).transpose(0, 2, 1, 3)
        k = (x @ lp["wk"]).reshape(B, S, N_HEADS, dk).transpose(0, 2, 1, 3)
        v = (x @ lp["wv"]).reshape(B, S, N_HEADS, dk).transpose(0, 2, 1, 3)
        sc = jnp.einsum("bhqd,bhkd->bhqk", q, k) / math.sqrt(dk)
        sc = jnp.where(mask[:, None, :, :] > 0.5, -1e9, sc)
        attn = jax.nn.softmax(sc, axis=-1)
        ctx = jnp.einsum("bhqk,bhkd->bhqd", attn, v).transpose(0, 2, 1, 3).reshape(B, S, D)
        h1 = ctx @ lp["wfc"] + x
        mu = h1.mean(-1, keepdims=True); var = ((h1 - mu) ** 2).mean(-1, keepdims=True)
        h1 = (h1 - mu) / jnp.sqrt(var + LN_EPS) * lp["ln1_g"] + lp["ln1_b"]
        f = jnp.maximum(h1 @ lp["w1"], 0.0) @ lp["w2"]
        h2 = f + h1
        mu = h2.mean(-1, keepdims=True); var = ((h2 - mu) ** 2).mean(-1, keepdims=True)
        x = (h2 - mu) / jnp.sqrt(var + LN_EPS) * lp["ln2_g"] + lp["ln2_b"]
    return x


if __name__ == "__main__":
    key = jax.random.PRNGKey(0)
    pkey, tkey = jax.random.split(key)
    params = init_params(pkey)
    pe_table = positional_encoding_table(SEQ, D_MODEL)
    kparams = prepare_kernel_params(params)

    # token ids in [1, VOCAB), with trailing pad (=0) tokens to exercise the mask
    token_ids = jax.random.randint(tkey, (BATCH, SEQ), 1, VOCAB, dtype=jnp.int32)
    token_ids = token_ids.at[:, -2:].set(0)

    out = encoder_forward(token_ids, kparams, pe_table)
    out = jax.block_until_ready(out)

    ref = encoder_forward_ref(token_ids, params, pe_table)
    # slightly relaxed tolerance: softmax uses the EUP approximate reciprocal
    np.testing.assert_allclose(np.asarray(out), np.asarray(ref), rtol=1e-3, atol=1e-3)

    print("KERNEL_OK")
</pallas_src>

<mosaic_0001>
module attributes {stable_mosaic.version = 11 : i64} {
  func.func @encoder_kernel(%arg0: memref<16x1xi32, #tpu.memory_space<vmem>>, %arg1: memref<2x8xi32, #tpu.memory_space<vmem>>, %arg2: memref<50x32xf32, #tpu.memory_space<vmem>>, %arg3: memref<8x32xf32, #tpu.memory_space<vmem>>, %arg4: memref<2x32x32xf32, #tpu.memory_space<vmem>>, %arg5: memref<2x32x32xf32, #tpu.memory_space<vmem>>, %arg6: memref<2x32x32xf32, #tpu.memory_space<vmem>>, %arg7: memref<2x32x32xf32, #tpu.memory_space<vmem>>, %arg8: memref<2x1x32xf32, #tpu.memory_space<vmem>>, %arg9: memref<2x1x32xf32, #tpu.memory_space<vmem>>, %arg10: memref<2x32x64xf32, #tpu.memory_space<vmem>>, %arg11: memref<2x64x32xf32, #tpu.memory_space<vmem>>, %arg12: memref<2x1x32xf32, #tpu.memory_space<vmem>>, %arg13: memref<2x1x32xf32, #tpu.memory_space<vmem>>, %arg14: memref<16x32xf32, #tpu.memory_space<vmem>>) attributes {dimension_semantics = [], scalar_prefetch = 0 : i64, scratch_operands = 0 : i64, tpu.core_type = #tpu.core_type<tc>} {
    %c0 = arith.constant 0 : index
    %c0_0 = arith.constant 0 : index
    %0 = vector.load %arg0[%c0, %c0_0] : memref<16x1xi32, #tpu.memory_space<vmem>>, vector<16x1xi32>
    %1 = tpu.iota {dimensions = array<i32: 1>} : vector<16x50xi32>
    %2 = vector.broadcast %0 : vector<16x1xi32> to vector<16x50xi32>
    %3 = arith.cmpi eq, %2, %1 : vector<16x50xi32>
    %4 = arith.extui %3 : vector<16x50xi1> to vector<16x50xi32>
    %5 = arith.sitofp %4 : vector<16x50xi32> to vector<16x50xf32>
    %c0_1 = arith.constant 0 : index
    %c0_2 = arith.constant 0 : index
    %6 = vector.load %arg2[%c0_1, %c0_2] : memref<50x32xf32, #tpu.memory_space<vmem>>, vector<50x32xf32>
    %cst = arith.constant dense<0.000000e+00> : vector<16x32xf32>
    %7 = tpu.matmul %5, %6, %cst {dimension_numbers = #tpu.dot_dimension_numbers<[1], [0], [0], [1], [0, 0, 1, 1], [], []>} : vector<16x50xf32>, vector<50x32xf32>, vector<16x32xf32> -> vector<16x32xf32>
    %c0_3 = arith.constant 0 : index
    %c0_4 = arith.constant 0 : index
    %8 = vector.load %arg3[%c0_3, %c0_4] : memref<8x32xf32, #tpu.memory_space<vmem>>, vector<8x32xf32>
    %9 = tpu.concatenate %8, %8 in 0 : vector<8x32xf32>, vector<8x32xf32> -> vector<16x32xf32>
    %10 = arith.addf %7, %9 : vector<16x32xf32>
    %c0_5 = arith.constant 0 : index
    %c0_6 = arith.constant 0 : index
    %11 = vector.load %arg1[%c0_5, %c0_6] : memref<2x8xi32, #tpu.memory_space<vmem>>, vector<2x8xi32>
    %c0_7 = arith.constant 0 : index
    %c0_8 = arith.constant 0 : index
    %c0_9 = arith.constant 0 : index
    %12 = vector.load %arg7[%c0_7, %c0_8, %c0_9] : memref<2x32x32xf32, #tpu.memory_space<vmem>>, vector<1x32x32xf32>
    %13 = vector.shape_cast %12 : vector<1x32x32xf32> to vector<32x32xf32>
    %c0_10 = arith.constant 0 : index
    %c0_11 = arith.constant 0 : index
    %c0_12 = arith.constant 0 : index
    %14 = vector.load %arg4[%c0_10, %c0_11, %c0_12] : memref<2x32x32xf32, #tpu.memory_space<vmem>>, vector<1x32x32xf32>
    %15 = vector.shape_cast %14 : vector<1x32x32xf32> to vector<32x32xf32>
    %cst_13 = arith.constant dense<0.000000e+00> : vector<16x32xf32>
    %16 = tpu.matmul %10, %15, %cst_13 {dimension_numbers = #tpu.dot_dimension_numbers<[1], [0], [0], [1], [0, 0, 1, 1], [], []>} : vector<16x32xf32>, vector<32x32xf32>, vector<16x32xf32> -> vector<16x32xf32>
    %c0_14 = arith.constant 0 : index
    %c0_15 = arith.constant 0 : index
    %c0_16 = arith.constant 0 : index
    %17 = vector.load %arg5[%c0_14, %c0_15, %c0_16] : memref<2x32x32xf32, #tpu.memory_space<vmem>>, vector<1x32x32xf32>
    %18 = vector.shape_cast %17 : vector<1x32x32xf32> to vector<32x32xf32>
    %cst_17 = arith.constant dense<0.000000e+00> : vector<16x32xf32>
    %19 = tpu.matmul %10, %18, %cst_17 {dimension_numbers = #tpu.dot_dimension_numbers<[1], [0], [0], [1], [0, 0, 1, 1], [], []>} : vector<16x32xf32>, vector<32x32xf32>, vector<16x32xf32> -> vector<16x32xf32>
    %c0_18 = arith.constant 0 : index
    %c0_19 = arith.constant 0 : index
    %c0_20 = arith.constant 0 : index
    %20 = vector.load %arg6[%c0_18, %c0_19, %c0_20] : memref<2x32x32xf32, #tpu.memory_space<vmem>>, vector<1x32x32xf32>
    %21 = vector.shape_cast %20 : vector<1x32x32xf32> to vector<32x32xf32>
    %cst_21 = arith.constant dense<0.000000e+00> : vector<16x32xf32>
    %22 = tpu.matmul %10, %21, %cst_21 {dimension_numbers = #tpu.dot_dimension_numbers<[1], [0], [0], [1], [0, 0, 1, 1], [], []>} : vector<16x32xf32>, vector<32x32xf32>, vector<16x32xf32> -> vector<16x32xf32>
    %23 = vector.extract_strided_slice %16 {offsets = [0, 0], sizes = [8, 8], strides = [1, 1]} : vector<16x32xf32> to vector<8x8xf32>
    %24 = vector.extract_strided_slice %16 {offsets = [0, 8], sizes = [8, 8], strides = [1, 1]} : vector<16x32xf32> to vector<8x8xf32>
    %25 = vector.extract_strided_slice %16 {offsets = [0, 16], sizes = [8, 8], strides = [1, 1]} : vector<16x32xf32> to vector<8x8xf32>
    %26 = vector.extract_strided_slice %16 {offsets = [0, 24], sizes = [8, 8], strides = [1, 1]} : vector<16x32xf32> to vector<8x8xf32>
    %27 = vector.shape_cast %23 : vector<8x8xf32> to vector<1x8x8xf32>
    %28 = vector.shape_cast %24 : vector<8x8xf32> to vector<1x8x8xf32>
    %29 = vector.shape_cast %25 : vector<8x8xf32> to vector<1x8x8xf32>
    %30 = vector.shape_cast %26 : vector<8x8xf32> to vector<1x8x8xf32>
    %31 = tpu.concatenate %27, %28, %29, %30 in 0 : vector<1x8x8xf32>, vector<1x8x8xf32>, vector<1x8x8xf32>, vector<1x8x8xf32> -> vector<4x8x8xf32>
    %32 = vector.extract_strided_slice %19 {offsets = [0, 0], sizes = [8, 8], strides = [1, 1]} : vector<16x32xf32> to vector<8x8xf32>
    %33 = vector.extract_strided_slice %19 {offsets = [0, 8], sizes = [8, 8], strides = [1, 1]} : vector<16x32xf32> to vector<8x8xf32>
    %34 = vector.extract_strided_slice %19 {offsets = [0, 16], sizes = [8, 8], strides = [1, 1]} : vector<16x32xf32> to vector<8x8xf32>
    %35 = vector.extract_strided_slice %19 {offsets = [0, 24], sizes = [8, 8], strides = [1, 1]} : vector<16x32xf32> to vector<8x8xf32>
    %36 = vector.shape_cast %32 : vector<8x8xf32> to vector<1x8x8xf32>
    %37 = vector.shape_cast %33 : vector<8x8xf32> to vector<1x8x8xf32>
    %38 = vector.shape_cast %34 : vector<8x8xf32> to vector<1x8x8xf32>
    %39 = vector.shape_cast %35 : vector<8x8xf32> to vector<1x8x8xf32>
    %40 = tpu.concatenate %36, %37, %38, %39 in 0 : vector<1x8x8xf32>, vector<1x8x8xf32>, vector<1x8x8xf32>, vector<1x8x8xf32> -> vector<4x8x8xf32>
    %41 = vector.extract_strided_slice %22 {offsets = [0, 0], sizes = [8, 8], strides = [1, 1]} : vector<16x32xf32> to vector<8x8xf32>
    %42 = vector.extract_strided_slice %22 {offsets = [0, 8], sizes = [8, 8], strides = [1, 1]} : vector<16x32xf32> to vector<8x8xf32>
    %43 = vector.extract_strided_slice %22 {offsets = [0, 16], sizes = [8, 8], strides = [1, 1]} : vector<16x32xf32> to vector<8x8xf32>
    %44 = vector.extract_strided_slice %22 {offsets = [0, 24], sizes = [8, 8], strides = [1, 1]} : vector<16x32xf32> to vector<8x8xf32>
    %45 = vector.shape_cast %41 : vector<8x8xf32> to vector<1x8x8xf32>
    %46 = vector.shape_cast %42 : vector<8x8xf32> to vector<1x8x8xf32>
    %47 = vector.shape_cast %43 : vector<8x8xf32> to vector<1x8x8xf32>
    %48 = vector.shape_cast %44 : vector<8x8xf32> to vector<1x8x8xf32>
    %49 = tpu.concatenate %45, %46, %47, %48 in 0 : vector<1x8x8xf32>, vector<1x8x8xf32>, vector<1x8x8xf32>, vector<1x8x8xf32> -> vector<4x8x8xf32>
    "tpu.trace_start"() <{level = 10 : i32, message = "hqd,hkd->hqk"}> : () -> ()
    %cst_22 = arith.constant dense<0.000000e+00> : vector<4x8x8xf32>
    %50 = tpu.matmul %31, %40, %cst_22 {dimension_numbers = #tpu.dot_dimension_numbers<[2], [2], [1], [1], [0, 0, 0, 1, 1, 1], [0], [0]>} : vector<4x8x8xf32>, vector<4x8x8xf32>, vector<4x8x8xf32> -> vector<4x8x8xf32>
    "tpu.trace_stop"() : () -> ()
    %51 = vector.extract_strided_slice %11 {offsets = [0, 0], sizes = [1, 8], strides = [1, 1]} : vector<2x8xi32> to vector<1x8xi32>
    %52 = vector.shape_cast %51 : vector<1x8xi32> to vector<1x1x8xi32>
    %c0_i32 = arith.constant 0 : i32
    %53 = vector.broadcast %c0_i32 : i32 to vector<1x1x8xi32>
    %54 = arith.cmpi eq, %52, %53 : vector<1x1x8xi32>
    %cst_23 = arith.constant -1.000000e+09 : f32
    %55 = vector.shape_cast %54 : vector<1x1x8xi1> to vector<1x1x8xi1>
    %56 = vector.broadcast %55 : vector<1x1x8xi1> to vector<4x8x8xi1>
    %57 = vector.broadcast %cst_23 : f32 to vector<4x8x8xf32>
    %58 = arith.select %56, %57, %50 : vector<4x8x8xi1>, vector<4x8x8xf32>
    %cst_24 = arith.constant dense<0xFF800000> : vector<4x8xf32>
    %59 = vector.multi_reduction <maximumf>, %58, %cst_24 [2] : vector<4x8x8xf32> to vector<4x8xf32>
    %60 = vector.shape_cast %59 : vector<4x8xf32> to vector<4x8x1xf32>
    %61 = vector.broadcast %60 : vector<4x8x1xf32> to vector<4x8x8xf32>
    %62 = arith.subf %58, %61 : vector<4x8x8xf32>
    %63 = math.exp %62 : vector<4x8x8xf32>
    %cst_25 = arith.constant dense<0.000000e+00> : vector<4x8xf32>
    %64 = vector.multi_reduction <add>, %63, %cst_25 [2] : vector<4x8x8xf32> to vector<4x8xf32>
    %65 = vector.shape_cast %64 : vector<4x8xf32> to vector<4x8x1xf32>
    %66 = tpu.reciprocal %65 {approx = true} : vector<4x8x1xf32> -> vector<4x8x1xf32>
    %67 = vector.broadcast %66 : vector<4x8x1xf32> to vector<4x8x8xf32>
    %68 = arith.mulf %63, %67 : vector<4x8x8xf32>
    "tpu.trace_start"() <{level = 10 : i32, message = "hqk,hkd->hqd"}> : () -> ()
    %cst_26 = arith.constant dense<0.000000e+00> : vector<4x8x8xf32>
    %69 = tpu.matmul %68, %49, %cst_26 {dimension_numbers = #tpu.dot_dimension_numbers<[2], [1], [1], [2], [0, 0, 0, 1, 1, 2], [0], [0]>} : vector<4x8x8xf32>, vector<4x8x8xf32>, vector<4x8x8xf32> -> vector<4x8x8xf32>
    %cst_27 = arith.constant 0.000000e+00 : f32
    "tpu.trace_stop"() : () -> ()
    %70 = vector.broadcast %cst_27 : f32 to vector<8x32xf32>
    %71 = vector.extract_strided_slice %69 {offsets = [0, 0, 0], sizes = [1, 8, 8], strides = [1, 1, 1]} : vector<4x8x8xf32> to vector<1x8x8xf32>
    %72 = vector.shape_cast %71 : vector<1x8x8xf32> to vector<8x8xf32>
    %73 = vector.extract_strided_slice %13 {offsets = [0, 0], sizes = [8, 32], strides = [1, 1]} : vector<32x32xf32> to vector<8x32xf32>
    %cst_28 = arith.constant dense<0.000000e+00> : vector<8x32xf32>
    %74 = tpu.matmul %72, %73, %cst_28 {dimension_numbers = #tpu.dot_dimension_numbers<[1], [0], [0], [1], [0, 0, 1, 1], [], []>} : vector<8x8xf32>, vector<8x32xf32>, vector<8x32xf32> -> vector<8x32xf32>
    %75 = arith.addf %70, %74 : vector<8x32xf32>
    %76 = vector.extract_strided_slice %69 {offsets = [1, 0, 0], sizes = [1, 8, 8], strides = [1, 1, 1]} : vector<4x8x8xf32> to vector<1x8x8xf32>
    %77 = vector.shape_cast %76 : vector<1x8x8xf32> to vector<8x8xf32>
    %78 = vector.extract_strided_slice %13 {offsets = [8, 0], sizes = [8, 32], strides = [1, 1]} : vector<32x32xf32> to vector<8x32xf32>
    %cst_29 = arith.constant dense<0.000000e+00> : vector<8x32xf32>
    %79 = tpu.matmul %77, %78, %cst_29 {dimension_numbers = #tpu.dot_dimension_numbers<[1], [0], [0], [1], [0, 0, 1, 1], [], []>} : vector<8x8xf32>, vector<8x32xf32>, vector<8x32xf32> -> vector<8x32xf32>
    %80 = arith.addf %75, %79 : vector<8x32xf32>
    %81 = vector.extract_strided_slice %69 {offsets = [2, 0, 0], sizes = [1, 8, 8], strides = [1, 1, 1]} : vector<4x8x8xf32> to vector<1x8x8xf32>
    %82 = vector.shape_cast %81 : vector<1x8x8xf32> to vector<8x8xf32>
    %83 = vector.extract_strided_slice %13 {offsets = [16, 0], sizes = [8, 32], strides = [1, 1]} : vector<32x32xf32> to vector<8x32xf32>
    %cst_30 = arith.constant dense<0.000000e+00> : vector<8x32xf32>
    %84 = tpu.matmul %82, %83, %cst_30 {dimension_numbers = #tpu.dot_dimension_numbers<[1], [0], [0], [1], [0, 0, 1, 1], [], []>} : vector<8x8xf32>, vector<8x32xf32>, vector<8x32xf32> -> vector<8x32xf32>
    %85 = arith.addf %80, %84 : vector<8x32xf32>
    %86 = vector.extract_strided_slice %69 {offsets = [3, 0, 0], sizes = [1, 8, 8], strides = [1, 1, 1]} : vector<4x8x8xf32> to vector<1x8x8xf32>
    %87 = vector.shape_cast %86 : vector<1x8x8xf32> to vector<8x8xf32>
    %88 = vector.extract_strided_slice %13 {offsets = [24, 0], sizes = [8, 32], strides = [1, 1]} : vector<32x32xf32> to vector<8x32xf32>
    %cst_31 = arith.constant dense<0.000000e+00> : vector<8x32xf32>
    %89 = tpu.matmul %87, %88, %cst_31 {dimension_numbers = #tpu.dot_dimension_numbers<[1], [0], [0], [1], [0, 0, 1, 1], [], []>} : vector<8x8xf32>, vector<8x32xf32>, vector<8x32xf32> -> vector<8x32xf32>
    %90 = arith.addf %85, %89 : vector<8x32xf32>
    %91 = vector.extract_strided_slice %16 {offsets = [8, 0], sizes = [8, 8], strides = [1, 1]} : vector<16x32xf32> to vector<8x8xf32>
    %92 = vector.extract_strided_slice %16 {offsets = [8, 8], sizes = [8, 8], strides = [1, 1]} : vector<16x32xf32> to vector<8x8xf32>
    %93 = vector.extract_strided_slice %16 {offsets = [8, 16], sizes = [8, 8], strides = [1, 1]} : vector<16x32xf32> to vector<8x8xf32>
    %94 = vector.extract_strided_slice %16 {offsets = [8, 24], sizes = [8, 8], strides = [1, 1]} : vector<16x32xf32> to vector<8x8xf32>
    %95 = vector.shape_cast %91 : vector<8x8xf32> to vector<1x8x8xf32>
    %96 = vector.shape_cast %92 : vector<8x8xf32> to vector<1x8x8xf32>
    %97 = vector.shape_cast %93 : vector<8x8xf32> to vector<1x8x8xf32>
    %98 = vector.shape_cast %94 : vector<8x8xf32> to vector<1x8x8xf32>
    %99 = tpu.concatenate %95, %96, %97, %98 in 0 : vector<1x8x8xf32>, vector<1x8x8xf32>, vector<1x8x8xf32>, vector<1x8x8xf32> -> vector<4x8x8xf32>
    %100 = vector.extract_strided_slice %19 {offsets = [8, 0], sizes = [8, 8], strides = [1, 1]} : vector<16x32xf32> to vector<8x8xf32>
    %101 = vector.extract_strided_slice %19 {offsets = [8, 8], sizes = [8, 8], strides = [1, 1]} : vector<16x32xf32> to vector<8x8xf32>
    %102 = vector.extract_strided_slice %19 {offsets = [8, 16], sizes = [8, 8], strides = [1, 1]} : vector<16x32xf32> to vector<8x8xf32>
    %103 = vector.extract_strided_slice %19 {offsets = [8, 24], sizes = [8, 8], strides = [1, 1]} : vector<16x32xf32> to vector<8x8xf32>
    %104 = vector.shape_cast %100 : vector<8x8xf32> to vector<1x8x8xf32>
    %105 = vector.shape_cast %101 : vector<8x8xf32> to vector<1x8x8xf32>
    %106 = vector.shape_cast %102 : vector<8x8xf32> to vector<1x8x8xf32>
    %107 = vector.shape_cast %103 : vector<8x8xf32> to vector<1x8x8xf32>
    %108 = tpu.concatenate %104, %105, %106, %107 in 0 : vector<1x8x8xf32>, vector<1x8x8xf32>, vector<1x8x8xf32>, vector<1x8x8xf32> -> vector<4x8x8xf32>
    %109 = vector.extract_strided_slice %22 {offsets = [8, 0], sizes = [8, 8], strides = [1, 1]} : vector<16x32xf32> to vector<8x8xf32>
    %110 = vector.extract_strided_slice %22 {offsets = [8, 8], sizes = [8, 8], strides = [1, 1]} : vector<16x32xf32> to vector<8x8xf32>
    %111 = vector.extract_strided_slice %22 {offsets = [8, 16], sizes = [8, 8], strides = [1, 1]} : vector<16x32xf32> to vector<8x8xf32>
    %112 = vector.extract_strided_slice %22 {offsets = [8, 24], sizes = [8, 8], strides = [1, 1]} : vector<16x32xf32> to vector<8x8xf32>
    %113 = vector.shape_cast %109 : vector<8x8xf32> to vector<1x8x8xf32>
    %114 = vector.shape_cast %110 : vector<8x8xf32> to vector<1x8x8xf32>
    %115 = vector.shape_cast %111 : vector<8x8xf32> to vector<1x8x8xf32>
    %116 = vector.shape_cast %112 : vector<8x8xf32> to vector<1x8x8xf32>
    %117 = tpu.concatenate %113, %114, %115, %116 in 0 : vector<1x8x8xf32>, vector<1x8x8xf32>, vector<1x8x8xf32>, vector<1x8x8xf32> -> vector<4x8x8xf32>
    "tpu.trace_start"() <{level = 10 : i32, message = "hqd,hkd->hqk"}> : () -> ()
    %cst_32 = arith.constant dense<0.000000e+00> : vector<4x8x8xf32>
    %118 = tpu.matmul %99, %108, %cst_32 {dimension_numbers = #tpu.dot_dimension_numbers<[2], [2], [1], [1], [0, 0, 0, 1, 1, 1], [0], [0]>} : vector<4x8x8xf32>, vector<4x8x8xf32>, vector<4x8x8xf32> -> vector<4x8x8xf32>
    "tpu.trace_stop"() : () -> ()
    %119 = vector.extract_strided_slice %11 {offsets = [1, 0], sizes = [1, 8], strides = [1, 1]} : vector<2x8xi32> to vector<1x8xi32>
    %120 = vector.shape_cast %119 : vector<1x8xi32> to vector<1x1x8xi32>
    %c0_i32_33 = arith.constant 0 : i32
    %121 = vector.broadcast %c0_i32_33 : i32 to vector<1x1x8xi32>
    %122 = arith.cmpi eq, %120, %121 : vector<1x1x8xi32>
    %cst_34 = arith.constant -1.000000e+09 : f32
    %123 = vector.shape_cast %122 : vector<1x1x8xi1> to vector<1x1x8xi1>
    %124 = vector.broadcast %123 : vector<1x1x8xi1> to vector<4x8x8xi1>
    %125 = vector.broadcast %cst_34 : f32 to vector<4x8x8xf32>
    %126 = arith.select %124, %125, %118 : vector<4x8x8xi1>, vector<4x8x8xf32>
    %cst_35 = arith.constant dense<0xFF800000> : vector<4x8xf32>
    %127 = vector.multi_reduction <maximumf>, %126, %cst_35 [2] : vector<4x8x8xf32> to vector<4x8xf32>
    %128 = vector.shape_cast %127 : vector<4x8xf32> to vector<4x8x1xf32>
    %129 = vector.broadcast %128 : vector<4x8x1xf32> to vector<4x8x8xf32>
    %130 = arith.subf %126, %129 : vector<4x8x8xf32>
    %131 = math.exp %130 : vector<4x8x8xf32>
    %cst_36 = arith.constant dense<0.000000e+00> : vector<4x8xf32>
    %132 = vector.multi_reduction <add>, %131, %cst_36 [2] : vector<4x8x8xf32> to vector<4x8xf32>
    %133 = vector.shape_cast %132 : vector<4x8xf32> to vector<4x8x1xf32>
    %134 = tpu.reciprocal %133 {approx = true} : vector<4x8x1xf32> -> vector<4x8x1xf32>
    %135 = vector.broadcast %134 : vector<4x8x1xf32> to vector<4x8x8xf32>
    %136 = arith.mulf %131, %135 : vector<4x8x8xf32>
    "tpu.trace_start"() <{level = 10 : i32, message = "hqk,hkd->hqd"}> : () -> ()
    %cst_37 = arith.constant dense<0.000000e+00> : vector<4x8x8xf32>
    %137 = tpu.matmul %136, %117, %cst_37 {dimension_numbers = #tpu.dot_dimension_numbers<[2], [1], [1], [2], [0, 0, 0, 1, 1, 2], [0], [0]>} : vector<4x8x8xf32>, vector<4x8x8xf32>, vector<4x8x8xf32> -> vector<4x8x8xf32>
    %cst_38 = arith.constant 0.000000e+00 : f32
    "tpu.trace_stop"() : () -> ()
    %138 = vector.broadcast %cst_38 : f32 to vector<8x32xf32>
    %139 = vector.extract_strided_slice %137 {offsets = [0, 0, 0], sizes = [1, 8, 8], strides = [1, 1, 1]} : vector<4x8x8xf32> to vector<1x8x8xf32>
    %140 = vector.shape_cast %139 : vector<1x8x8xf32> to vector<8x8xf32>
    %141 = vector.extract_strided_slice %13 {offsets = [0, 0], sizes = [8, 32], strides = [1, 1]} : vector<32x32xf32> to vector<8x32xf32>
    %cst_39 = arith.constant dense<0.000000e+00> : vector<8x32xf32>
    %142 = tpu.matmul %140, %141, %cst_39 {dimension_numbers = #tpu.dot_dimension_numbers<[1], [0], [0], [1], [0, 0, 1, 1], [], []>} : vector<8x8xf32>, vector<8x32xf32>, vector<8x32xf32> -> vector<8x32xf32>
    %143 = arith.addf %138, %142 : vector<8x32xf32>
    %144 = vector.extract_strided_slice %137 {offsets = [1, 0, 0], sizes = [1, 8, 8], strides = [1, 1, 1]} : vector<4x8x8xf32> to vector<1x8x8xf32>
    %145 = vector.shape_cast %144 : vector<1x8x8xf32> to vector<8x8xf32>
    %146 = vector.extract_strided_slice %13 {offsets = [8, 0], sizes = [8, 32], strides = [1, 1]} : vector<32x32xf32> to vector<8x32xf32>
    %cst_40 = arith.constant dense<0.000000e+00> : vector<8x32xf32>
    %147 = tpu.matmul %145, %146, %cst_40 {dimension_numbers = #tpu.dot_dimension_numbers<[1], [0], [0], [1], [0, 0, 1, 1], [], []>} : vector<8x8xf32>, vector<8x32xf32>, vector<8x32xf32> -> vector<8x32xf32>
    %148 = arith.addf %143, %147 : vector<8x32xf32>
    %149 = vector.extract_strided_slice %137 {offsets = [2, 0, 0], sizes = [1, 8, 8], strides = [1, 1, 1]} : vector<4x8x8xf32> to vector<1x8x8xf32>
    %150 = vector.shape_cast %149 : vector<1x8x8xf32> to vector<8x8xf32>
    %151 = vector.extract_strided_slice %13 {offsets = [16, 0], sizes = [8, 32], strides = [1, 1]} : vector<32x32xf32> to vector<8x32xf32>
    %cst_41 = arith.constant dense<0.000000e+00> : vector<8x32xf32>
    %152 = tpu.matmul %150, %151, %cst_41 {dimension_numbers = #tpu.dot_dimension_numbers<[1], [0], [0], [1], [0, 0, 1, 1], [], []>} : vector<8x8xf32>, vector<8x32xf32>, vector<8x32xf32> -> vector<8x32xf32>
    %153 = arith.addf %148, %152 : vector<8x32xf32>
    %154 = vector.extract_strided_slice %137 {offsets = [3, 0, 0], sizes = [1, 8, 8], strides = [1, 1, 1]} : vector<4x8x8xf32> to vector<1x8x8xf32>
    %155 = vector.shape_cast %154 : vector<1x8x8xf32> to vector<8x8xf32>
    %156 = vector.extract_strided_slice %13 {offsets = [24, 0], sizes = [8, 32], strides = [1, 1]} : vector<32x32xf32> to vector<8x32xf32>
    %cst_42 = arith.constant dense<0.000000e+00> : vector<8x32xf32>
    %157 = tpu.matmul %155, %156, %cst_42 {dimension_numbers = #tpu.dot_dimension_numbers<[1], [0], [0], [1], [0, 0, 1, 1], [], []>} : vector<8x8xf32>, vector<8x32xf32>, vector<8x32xf32> -> vector<8x32xf32>
    %158 = arith.addf %153, %157 : vector<8x32xf32>
    %159 = tpu.concatenate %90, %158 in 0 : vector<8x32xf32>, vector<8x32xf32> -> vector<16x32xf32>
    %160 = arith.addf %159, %10 : vector<16x32xf32>
    %c0_43 = arith.constant 0 : index
    %c0_44 = arith.constant 0 : index
    %c0_45 = arith.constant 0 : index
    %161 = vector.load %arg8[%c0_43, %c0_44, %c0_45] : memref<2x1x32xf32, #tpu.memory_space<vmem>>, vector<1x1x32xf32>
    %162 = vector.shape_cast %161 : vector<1x1x32xf32> to vector<1x32xf32>
    %c0_46 = arith.constant 0 : index
    %c0_47 = arith.constant 0 : index
    %c0_48 = arith.constant 0 : index
    %163 = vector.load %arg9[%c0_46, %c0_47, %c0_48] : memref<2x1x32xf32, #tpu.memory_space<vmem>>, vector<1x1x32xf32>
    %164 = vector.shape_cast %163 : vector<1x1x32xf32> to vector<1x32xf32>
    %cst_49 = arith.constant dense<0.000000e+00> : vector<16xf32>
    %165 = vector.multi_reduction <add>, %160, %cst_49 [1] : vector<16x32xf32> to vector<16xf32>
    %166 = vector.shape_cast %165 : vector<16xf32> to vector<16x1xf32>
    %cst_50 = arith.constant 3.200000e+01 : f32
    %167 = vector.broadcast %cst_50 : f32 to vector<16x1xf32>
    %168 = arith.divf %166, %167 : vector<16x1xf32>
    %169 = vector.broadcast %168 : vector<16x1xf32> to vector<16x32xf32>
    %170 = arith.subf %160, %169 : vector<16x32xf32>
    %171 = arith.mulf %170, %170 : vector<16x32xf32>
    %cst_51 = arith.constant dense<0.000000e+00> : vector<16xf32>
    %172 = vector.multi_reduction <add>, %171, %cst_51 [1] : vector<16x32xf32> to vector<16xf32>
    %173 = vector.shape_cast %172 : vector<16xf32> to vector<16x1xf32>
    %cst_52 = arith.constant 3.200000e+01 : f32
    %174 = vector.broadcast %cst_52 : f32 to vector<16x1xf32>
    %175 = arith.divf %173, %174 : vector<16x1xf32>
    %176 = vector.broadcast %168 : vector<16x1xf32> to vector<16x32xf32>
    %177 = arith.subf %160, %176 : vector<16x32xf32>
    %cst_53 = arith.constant 9.99999974E-6 : f32
    %178 = vector.broadcast %cst_53 : f32 to vector<16x1xf32>
    %179 = arith.addf %175, %178 : vector<16x1xf32>
    %180 = math.rsqrt %179 : vector<16x1xf32>
    %181 = vector.broadcast %180 : vector<16x1xf32> to vector<16x32xf32>
    %182 = arith.mulf %177, %181 : vector<16x32xf32>
    %183 = vector.broadcast %162 : vector<1x32xf32> to vector<16x32xf32>
    %184 = arith.mulf %182, %183 : vector<16x32xf32>
    %185 = vector.broadcast %164 : vector<1x32xf32> to vector<16x32xf32>
    %186 = arith.addf %184, %185 : vector<16x32xf32>
    %c0_54 = arith.constant 0 : index
    %c0_55 = arith.constant 0 : index
    %c0_56 = arith.constant 0 : index
    %187 = vector.load %arg10[%c0_54, %c0_55, %c0_56] : memref<2x32x64xf32, #tpu.memory_space<vmem>>, vector<1x32x64xf32>
    %188 = vector.shape_cast %187 : vector<1x32x64xf32> to vector<32x64xf32>
    %cst_57 = arith.constant dense<0.000000e+00> : vector<16x64xf32>
    %189 = tpu.matmul %186, %188, %cst_57 {dimension_numbers = #tpu.dot_dimension_numbers<[1], [0], [0], [1], [0, 0, 1, 1], [], []>} : vector<16x32xf32>, vector<32x64xf32>, vector<16x64xf32> -> vector<16x64xf32>
    %cst_58 = arith.constant 0.000000e+00 : f32
    %190 = vector.broadcast %cst_58 : f32 to vector<16x64xf32>
    %191 = arith.maximumf %189, %190 : vector<16x64xf32>
    %c0_59 = arith.constant 0 : index
    %c0_60 = arith.constant 0 : index
    %c0_61 = arith.constant 0 : index
    %192 = vector.load %arg11[%c0_59, %c0_60, %c0_61] : memref<2x64x32xf32, #tpu.memory_space<vmem>>, vector<1x64x32xf32>
    %193 = vector.shape_cast %192 : vector<1x64x32xf32> to vector<64x32xf32>
    %cst_62 = arith.constant dense<0.000000e+00> : vector<16x32xf32>
    %194 = tpu.matmul %191, %193, %cst_62 {dimension_numbers = #tpu.dot_dimension_numbers<[1], [0], [0], [1], [0, 0, 1, 1], [], []>} : vector<16x64xf32>, vector<64x32xf32>, vector<16x32xf32> -> vector<16x32xf32>
    %195 = arith.addf %194, %186 : vector<16x32xf32>
    %c0_63 = arith.constant 0 : index
    %c0_64 = arith.constant 0 : index
    %c0_65 = arith.constant 0 : index
    %196 = vector.load %arg12[%c0_63, %c0_64, %c0_65] : memref<2x1x32xf32, #tpu.memory_space<vmem>>, vector<1x1x32xf32>
    %197 = vector.shape_cast %196 : vector<1x1x32xf32> to vector<1x32xf32>
    %c0_66 = arith.constant 0 : index
    %c0_67 = arith.constant 0 : index
    %c0_68 = arith.constant 0 : index
    %198 = vector.load %arg13[%c0_66, %c0_67, %c0_68] : memref<2x1x32xf32, #tpu.memory_space<vmem>>, vector<1x1x32xf32>
    %199 = vector.shape_cast %198 : vector<1x1x32xf32> to vector<1x32xf32>
    %cst_69 = arith.constant dense<0.000000e+00> : vector<16xf32>
    %200 = vector.multi_reduction <add>, %195, %cst_69 [1] : vector<16x32xf32> to vector<16xf32>
    %201 = vector.shape_cast %200 : vector<16xf32> to vector<16x1xf32>
    %cst_70 = arith.constant 3.200000e+01 : f32
    %202 = vector.broadcast %cst_70 : f32 to vector<16x1xf32>
    %203 = arith.divf %201, %202 : vector<16x1xf32>
    %204 = vector.broadcast %203 : vector<16x1xf32> to vector<16x32xf32>
    %205 = arith.subf %195, %204 : vector<16x32xf32>
    %206 = arith.mulf %205, %205 : vector<16x32xf32>
    %cst_71 = arith.constant dense<0.000000e+00> : vector<16xf32>
    %207 = vector.multi_reduction <add>, %206, %cst_71 [1] : vector<16x32xf32> to vector<16xf32>
    %208 = vector.shape_cast %207 : vector<16xf32> to vector<16x1xf32>
    %cst_72 = arith.constant 3.200000e+01 : f32
    %209 = vector.broadcast %cst_72 : f32 to vector<16x1xf32>
    %210 = arith.divf %208, %209 : vector<16x1xf32>
    %211 = vector.broadcast %203 : vector<16x1xf32> to vector<16x32xf32>
    %212 = arith.subf %195, %211 : vector<16x32xf32>
    %cst_73 = arith.constant 9.99999974E-6 : f32
    %213 = vector.broadcast %cst_73 : f32 to vector<16x1xf32>
    %214 = arith.addf %210, %213 : vector<16x1xf32>
    %215 = math.rsqrt %214 : vector<16x1xf32>
    %216 = vector.broadcast %215 : vector<16x1xf32> to vector<16x32xf32>
    %217 = arith.mulf %212, %216 : vector<16x32xf32>
    %218 = vector.broadcast %197 : vector<1x32xf32> to vector<16x32xf32>
    %219 = arith.mulf %217, %218 : vector<16x32xf32>
    %220 = vector.broadcast %199 : vector<1x32xf32> to vector<16x32xf32>
    %221 = arith.addf %219, %220 : vector<16x32xf32>
    %c1 = arith.constant 1 : index
    %c0_74 = arith.constant 0 : index
    %c0_75 = arith.constant 0 : index
    %222 = vector.load %arg7[%c1, %c0_74, %c0_75] : memref<2x32x32xf32, #tpu.memory_space<vmem>>, vector<1x32x32xf32>
    %223 = vector.shape_cast %222 : vector<1x32x32xf32> to vector<32x32xf32>
    %c1_76 = arith.constant 1 : index
    %c0_77 = arith.constant 0 : index
    %c0_78 = arith.constant 0 : index
    %224 = vector.load %arg4[%c1_76, %c0_77, %c0_78] : memref<2x32x32xf32, #tpu.memory_space<vmem>>, vector<1x32x32xf32>
    %225 = vector.shape_cast %224 : vector<1x32x32xf32> to vector<32x32xf32>
    %cst_79 = arith.constant dense<0.000000e+00> : vector<16x32xf32>
    %226 = tpu.matmul %221, %225, %cst_79 {dimension_numbers = #tpu.dot_dimension_numbers<[1], [0], [0], [1], [0, 0, 1, 1], [], []>} : vector<16x32xf32>, vector<32x32xf32>, vector<16x32xf32> -> vector<16x32xf32>
    %c1_80 = arith.constant 1 : index
    %c0_81 = arith.constant 0 : index
    %c0_82 = arith.constant 0 : index
    %227 = vector.load %arg5[%c1_80, %c0_81, %c0_82] : memref<2x32x32xf32, #tpu.memory_space<vmem>>, vector<1x32x32xf32>
    %228 = vector.shape_cast %227 : vector<1x32x32xf32> to vector<32x32xf32>
    %cst_83 = arith.constant dense<0.000000e+00> : vector<16x32xf32>
    %229 = tpu.matmul %221, %228, %cst_83 {dimension_numbers = #tpu.dot_dimension_numbers<[1], [0], [0], [1], [0, 0, 1, 1], [], []>} : vector<16x32xf32>, vector<32x32xf32>, vector<16x32xf32> -> vector<16x32xf32>
    %c1_84 = arith.constant 1 : index
    %c0_85 = arith.constant 0 : index
    %c0_86 = arith.constant 0 : index
    %230 = vector.load %arg6[%c1_84, %c0_85, %c0_86] : memref<2x32x32xf32, #tpu.memory_space<vmem>>, vector<1x32x32xf32>
    %231 = vector.shape_cast %230 : vector<1x32x32xf32> to vector<32x32xf32>
    %cst_87 = arith.constant dense<0.000000e+00> : vector<16x32xf32>
    %232 = tpu.matmul %221, %231, %cst_87 {dimension_numbers = #tpu.dot_dimension_numbers<[1], [0], [0], [1], [0, 0, 1, 1], [], []>} : vector<16x32xf32>, vector<32x32xf32>, vector<16x32xf32> -> vector<16x32xf32>
    %233 = vector.extract_strided_slice %226 {offsets = [0, 0], sizes = [8, 8], strides = [1, 1]} : vector<16x32xf32> to vector<8x8xf32>
    %234 = vector.extract_strided_slice %226 {offsets = [0, 8], sizes = [8, 8], strides = [1, 1]} : vector<16x32xf32> to vector<8x8xf32>
    %235 = vector.extract_strided_slice %226 {offsets = [0, 16], sizes = [8, 8], strides = [1, 1]} : vector<16x32xf32> to vector<8x8xf32>
    %236 = vector.extract_strided_slice %226 {offsets = [0, 24], sizes = [8, 8], strides = [1, 1]} : vector<16x32xf32> to vector<8x8xf32>
    %237 = vector.shape_cast %233 : vector<8x8xf32> to vector<1x8x8xf32>
    %238 = vector.shape_cast %234 : vector<8x8xf32> to vector<1x8x8xf32>
    %239 = vector.shape_cast %235 : vector<8x8xf32> to vector<1x8x8xf32>
    %240 = vector.shape_cast %236 : vector<8x8xf32> to vector<1x8x8xf32>
    %241 = tpu.concatenate %237, %238, %239, %240 in 0 : vector<1x8x8xf32>, vector<1x8x8xf32>, vector<1x8x8xf32>, vector<1x8x8xf32> -> vector<4x8x8xf32>
    %242 = vector.extract_strided_slice %229 {offsets = [0, 0], sizes = [8, 8], strides = [1, 1]} : vector<16x32xf32> to vector<8x8xf32>
    %243 = vector.extract_strided_slice %229 {offsets = [0, 8], sizes = [8, 8], strides = [1, 1]} : vector<16x32xf32> to vector<8x8xf32>
    %244 = vector.extract_strided_slice %229 {offsets = [0, 16], sizes = [8, 8], strides = [1, 1]} : vector<16x32xf32> to vector<8x8xf32>
    %245 = vector.extract_strided_slice %229 {offsets = [0, 24], sizes = [8, 8], strides = [1, 1]} : vector<16x32xf32> to vector<8x8xf32>
    %246 = vector.shape_cast %242 : vector<8x8xf32> to vector<1x8x8xf32>
    %247 = vector.shape_cast %243 : vector<8x8xf32> to vector<1x8x8xf32>
    %248 = vector.shape_cast %244 : vector<8x8xf32> to vector<1x8x8xf32>
    %249 = vector.shape_cast %245 : vector<8x8xf32> to vector<1x8x8xf32>
    %250 = tpu.concatenate %246, %247, %248, %249 in 0 : vector<1x8x8xf32>, vector<1x8x8xf32>, vector<1x8x8xf32>, vector<1x8x8xf32> -> vector<4x8x8xf32>
    %251 = vector.extract_strided_slice %232 {offsets = [0, 0], sizes = [8, 8], strides = [1, 1]} : vector<16x32xf32> to vector<8x8xf32>
    %252 = vector.extract_strided_slice %232 {offsets = [0, 8], sizes = [8, 8], strides = [1, 1]} : vector<16x32xf32> to vector<8x8xf32>
    %253 = vector.extract_strided_slice %232 {offsets = [0, 16], sizes = [8, 8], strides = [1, 1]} : vector<16x32xf32> to vector<8x8xf32>
    %254 = vector.extract_strided_slice %232 {offsets = [0, 24], sizes = [8, 8], strides = [1, 1]} : vector<16x32xf32> to vector<8x8xf32>
    %255 = vector.shape_cast %251 : vector<8x8xf32> to vector<1x8x8xf32>
    %256 = vector.shape_cast %252 : vector<8x8xf32> to vector<1x8x8xf32>
    %257 = vector.shape_cast %253 : vector<8x8xf32> to vector<1x8x8xf32>
    %258 = vector.shape_cast %254 : vector<8x8xf32> to vector<1x8x8xf32>
    %259 = tpu.concatenate %255, %256, %257, %258 in 0 : vector<1x8x8xf32>, vector<1x8x8xf32>, vector<1x8x8xf32>, vector<1x8x8xf32> -> vector<4x8x8xf32>
    "tpu.trace_start"() <{level = 10 : i32, message = "hqd,hkd->hqk"}> : () -> ()
    %cst_88 = arith.constant dense<0.000000e+00> : vector<4x8x8xf32>
    %260 = tpu.matmul %241, %250, %cst_88 {dimension_numbers = #tpu.dot_dimension_numbers<[2], [2], [1], [1], [0, 0, 0, 1, 1, 1], [0], [0]>} : vector<4x8x8xf32>, vector<4x8x8xf32>, vector<4x8x8xf32> -> vector<4x8x8xf32>
    "tpu.trace_stop"() : () -> ()
    %261 = vector.extract_strided_slice %11 {offsets = [0, 0], sizes = [1, 8], strides = [1, 1]} : vector<2x8xi32> to vector<1x8xi32>
    %262 = vector.shape_cast %261 : vector<1x8xi32> to vector<1x1x8xi32>
    %c0_i32_89 = arith.constant 0 : i32
    %263 = vector.broadcast %c0_i32_89 : i32 to vector<1x1x8xi32>
    %264 = arith.cmpi eq, %262, %263 : vector<1x1x8xi32>
    %cst_90 = arith.constant -1.000000e+09 : f32
    %265 = vector.shape_cast %264 : vector<1x1x8xi1> to vector<1x1x8xi1>
    %266 = vector.broadcast %265 : vector<1x1x8xi1> to vector<4x8x8xi1>
    %267 = vector.broadcast %cst_90 : f32 to vector<4x8x8xf32>
    %268 = arith.select %266, %267, %260 : vector<4x8x8xi1>, vector<4x8x8xf32>
    %cst_91 = arith.constant dense<0xFF800000> : vector<4x8xf32>
    %269 = vector.multi_reduction <maximumf>, %268, %cst_91 [2] : vector<4x8x8xf32> to vector<4x8xf32>
    %270 = vector.shape_cast %269 : vector<4x8xf32> to vector<4x8x1xf32>
    %271 = vector.broadcast %270 : vector<4x8x1xf32> to vector<4x8x8xf32>
    %272 = arith.subf %268, %271 : vector<4x8x8xf32>
    %273 = math.exp %272 : vector<4x8x8xf32>
    %cst_92 = arith.constant dense<0.000000e+00> : vector<4x8xf32>
    %274 = vector.multi_reduction <add>, %273, %cst_92 [2] : vector<4x8x8xf32> to vector<4x8xf32>
    %275 = vector.shape_cast %274 : vector<4x8xf32> to vector<4x8x1xf32>
    %276 = tpu.reciprocal %275 {approx = true} : vector<4x8x1xf32> -> vector<4x8x1xf32>
    %277 = vector.broadcast %276 : vector<4x8x1xf32> to vector<4x8x8xf32>
    %278 = arith.mulf %273, %277 : vector<4x8x8xf32>
    "tpu.trace_start"() <{level = 10 : i32, message = "hqk,hkd->hqd"}> : () -> ()
    %cst_93 = arith.constant dense<0.000000e+00> : vector<4x8x8xf32>
    %279 = tpu.matmul %278, %259, %cst_93 {dimension_numbers = #tpu.dot_dimension_numbers<[2], [1], [1], [2], [0, 0, 0, 1, 1, 2], [0], [0]>} : vector<4x8x8xf32>, vector<4x8x8xf32>, vector<4x8x8xf32> -> vector<4x8x8xf32>
    %cst_94 = arith.constant 0.000000e+00 : f32
    "tpu.trace_stop"() : () -> ()
    %280 = vector.broadcast %cst_94 : f32 to vector<8x32xf32>
    %281 = vector.extract_strided_slice %279 {offsets = [0, 0, 0], sizes = [1, 8, 8], strides = [1, 1, 1]} : vector<4x8x8xf32> to vector<1x8x8xf32>
    %282 = vector.shape_cast %281 : vector<1x8x8xf32> to vector<8x8xf32>
    %283 = vector.extract_strided_slice %223 {offsets = [0, 0], sizes = [8, 32], strides = [1, 1]} : vector<32x32xf32> to vector<8x32xf32>
    %cst_95 = arith.constant dense<0.000000e+00> : vector<8x32xf32>
    %284 = tpu.matmul %282, %283, %cst_95 {dimension_numbers = #tpu.dot_dimension_numbers<[1], [0], [0], [1], [0, 0, 1, 1], [], []>} : vector<8x8xf32>, vector<8x32xf32>, vector<8x32xf32> -> vector<8x32xf32>
    %285 = arith.addf %280, %284 : vector<8x32xf32>
    %286 = vector.extract_strided_slice %279 {offsets = [1, 0, 0], sizes = [1, 8, 8], strides = [1, 1, 1]} : vector<4x8x8xf32> to vector<1x8x8xf32>
    %287 = vector.shape_cast %286 : vector<1x8x8xf32> to vector<8x8xf32>
    %288 = vector.extract_strided_slice %223 {offsets = [8, 0], sizes = [8, 32], strides = [1, 1]} : vector<32x32xf32> to vector<8x32xf32>
    %cst_96 = arith.constant dense<0.000000e+00> : vector<8x32xf32>
    %289 = tpu.matmul %287, %288, %cst_96 {dimension_numbers = #tpu.dot_dimension_numbers<[1], [0], [0], [1], [0, 0, 1, 1], [], []>} : vector<8x8xf32>, vector<8x32xf32>, vector<8x32xf32> -> vector<8x32xf32>
    %290 = arith.addf %285, %289 : vector<8x32xf32>
    %291 = vector.extract_strided_slice %279 {offsets = [2, 0, 0], sizes = [1, 8, 8], strides = [1, 1, 1]} : vector<4x8x8xf32> to vector<1x8x8xf32>
    %292 = vector.shape_cast %291 : vector<1x8x8xf32> to vector<8x8xf32>
    %293 = vector.extract_strided_slice %223 {offsets = [16, 0], sizes = [8, 32], strides = [1, 1]} : vector<32x32xf32> to vector<8x32xf32>
    %cst_97 = arith.constant dense<0.000000e+00> : vector<8x32xf32>
    %294 = tpu.matmul %292, %293, %cst_97 {dimension_numbers = #tpu.dot_dimension_numbers<[1], [0], [0], [1], [0, 0, 1, 1], [], []>} : vector<8x8xf32>, vector<8x32xf32>, vector<8x32xf32> -> vector<8x32xf32>
    %295 = arith.addf %290, %294 : vector<8x32xf32>
    %296 = vector.extract_strided_slice %279 {offsets = [3, 0, 0], sizes = [1, 8, 8], strides = [1, 1, 1]} : vector<4x8x8xf32> to vector<1x8x8xf32>
    %297 = vector.shape_cast %296 : vector<1x8x8xf32> to vector<8x8xf32>
    %298 = vector.extract_strided_slice %223 {offsets = [24, 0], sizes = [8, 32], strides = [1, 1]} : vector<32x32xf32> to vector<8x32xf32>
    %cst_98 = arith.constant dense<0.000000e+00> : vector<8x32xf32>
    %299 = tpu.matmul %297, %298, %cst_98 {dimension_numbers = #tpu.dot_dimension_numbers<[1], [0], [0], [1], [0, 0, 1, 1], [], []>} : vector<8x8xf32>, vector<8x32xf32>, vector<8x32xf32> -> vector<8x32xf32>
    %300 = arith.addf %295, %299 : vector<8x32xf32>
    %301 = vector.extract_strided_slice %226 {offsets = [8, 0], sizes = [8, 8], strides = [1, 1]} : vector<16x32xf32> to vector<8x8xf32>
    %302 = vector.extract_strided_slice %226 {offsets = [8, 8], sizes = [8, 8], strides = [1, 1]} : vector<16x32xf32> to vector<8x8xf32>
    %303 = vector.extract_strided_slice %226 {offsets = [8, 16], sizes = [8, 8], strides = [1, 1]} : vector<16x32xf32> to vector<8x8xf32>
    %304 = vector.extract_strided_slice %226 {offsets = [8, 24], sizes = [8, 8], strides = [1, 1]} : vector<16x32xf32> to vector<8x8xf32>
    %305 = vector.shape_cast %301 : vector<8x8xf32> to vector<1x8x8xf32>
    %306 = vector.shape_cast %302 : vector<8x8xf32> to vector<1x8x8xf32>
    %307 = vector.shape_cast %303 : vector<8x8xf32> to vector<1x8x8xf32>
    %308 = vector.shape_cast %304 : vector<8x8xf32> to vector<1x8x8xf32>
    %309 = tpu.concatenate %305, %306, %307, %308 in 0 : vector<1x8x8xf32>, vector<1x8x8xf32>, vector<1x8x8xf32>, vector<1x8x8xf32> -> vector<4x8x8xf32>
    %310 = vector.extract_strided_slice %229 {offsets = [8, 0], sizes = [8, 8], strides = [1, 1]} : vector<16x32xf32> to vector<8x8xf32>
    %311 = vector.extract_strided_slice %229 {offsets = [8, 8], sizes = [8, 8], strides = [1, 1]} : vector<16x32xf32> to vector<8x8xf32>
    %312 = vector.extract_strided_slice %229 {offsets = [8, 16], sizes = [8, 8], strides = [1, 1]} : vector<16x32xf32> to vector<8x8xf32>
    %313 = vector.extract_strided_slice %229 {offsets = [8, 24], sizes = [8, 8], strides = [1, 1]} : vector<16x32xf32> to vector<8x8xf32>
    %314 = vector.shape_cast %310 : vector<8x8xf32> to vector<1x8x8xf32>
    %315 = vector.shape_cast %311 : vector<8x8xf32> to vector<1x8x8xf32>
    %316 = vector.shape_cast %312 : vector<8x8xf32> to vector<1x8x8xf32>
    %317 = vector.shape_cast %313 : vector<8x8xf32> to vector<1x8x8xf32>
    %318 = tpu.concatenate %314, %315, %316, %317 in 0 : vector<1x8x8xf32>, vector<1x8x8xf32>, vector<1x8x8xf32>, vector<1x8x8xf32> -> vector<4x8x8xf32>
    %319 = vector.extract_strided_slice %232 {offsets = [8, 0], sizes = [8, 8], strides = [1, 1]} : vector<16x32xf32> to vector<8x8xf32>
    %320 = vector.extract_strided_slice %232 {offsets = [8, 8], sizes = [8, 8], strides = [1, 1]} : vector<16x32xf32> to vector<8x8xf32>
    %321 = vector.extract_strided_slice %232 {offsets = [8, 16], sizes = [8, 8], strides = [1, 1]} : vector<16x32xf32> to vector<8x8xf32>
    %322 = vector.extract_strided_slice %232 {offsets = [8, 24], sizes = [8, 8], strides = [1, 1]} : vector<16x32xf32> to vector<8x8xf32>
    %323 = vector.shape_cast %319 : vector<8x8xf32> to vector<1x8x8xf32>
    %324 = vector.shape_cast %320 : vector<8x8xf32> to vector<1x8x8xf32>
    %325 = vector.shape_cast %321 : vector<8x8xf32> to vector<1x8x8xf32>
    %326 = vector.shape_cast %322 : vector<8x8xf32> to vector<1x8x8xf32>
    %327 = tpu.concatenate %323, %324, %325, %326 in 0 : vector<1x8x8xf32>, vector<1x8x8xf32>, vector<1x8x8xf32>, vector<1x8x8xf32> -> vector<4x8x8xf32>
    "tpu.trace_start"() <{level = 10 : i32, message = "hqd,hkd->hqk"}> : () -> ()
    %cst_99 = arith.constant dense<0.000000e+00> : vector<4x8x8xf32>
    %328 = tpu.matmul %309, %318, %cst_99 {dimension_numbers = #tpu.dot_dimension_numbers<[2], [2], [1], [1], [0, 0, 0, 1, 1, 1], [0], [0]>} : vector<4x8x8xf32>, vector<4x8x8xf32>, vector<4x8x8xf32> -> vector<4x8x8xf32>
    "tpu.trace_stop"() : () -> ()
    %329 = vector.extract_strided_slice %11 {offsets = [1, 0], sizes = [1, 8], strides = [1, 1]} : vector<2x8xi32> to vector<1x8xi32>
    %330 = vector.shape_cast %329 : vector<1x8xi32> to vector<1x1x8xi32>
    %c0_i32_100 = arith.constant 0 : i32
    %331 = vector.broadcast %c0_i32_100 : i32 to vector<1x1x8xi32>
    %332 = arith.cmpi eq, %330, %331 : vector<1x1x8xi32>
    %cst_101 = arith.constant -1.000000e+09 : f32
    %333 = vector.shape_cast %332 : vector<1x1x8xi1> to vector<1x1x8xi1>
    %334 = vector.broadcast %333 : vector<1x1x8xi1> to vector<4x8x8xi1>
    %335 = vector.broadcast %cst_101 : f32 to vector<4x8x8xf32>
    %336 = arith.select %334, %335, %328 : vector<4x8x8xi1>, vector<4x8x8xf32>
    %cst_102 = arith.constant dense<0xFF800000> : vector<4x8xf32>
    %337 = vector.multi_reduction <maximumf>, %336, %cst_102 [2] : vector<4x8x8xf32> to vector<4x8xf32>
    %338 = vector.shape_cast %337 : vector<4x8xf32> to vector<4x8x1xf32>
    %339 = vector.broadcast %338 : vector<4x8x1xf32> to vector<4x8x8xf32>
    %340 = arith.subf %336, %339 : vector<4x8x8xf32>
    %341 = math.exp %340 : vector<4x8x8xf32>
    %cst_103 = arith.constant dense<0.000000e+00> : vector<4x8xf32>
    %342 = vector.multi_reduction <add>, %341, %cst_103 [2] : vector<4x8x8xf32> to vector<4x8xf32>
    %343 = vector.shape_cast %342 : vector<4x8xf32> to vector<4x8x1xf32>
    %344 = tpu.reciprocal %343 {approx = true} : vector<4x8x1xf32> -> vector<4x8x1xf32>
    %345 = vector.broadcast %344 : vector<4x8x1xf32> to vector<4x8x8xf32>
    %346 = arith.mulf %341, %345 : vector<4x8x8xf32>
    "tpu.trace_start"() <{level = 10 : i32, message = "hqk,hkd->hqd"}> : () -> ()
    %cst_104 = arith.constant dense<0.000000e+00> : vector<4x8x8xf32>
    %347 = tpu.matmul %346, %327, %cst_104 {dimension_numbers = #tpu.dot_dimension_numbers<[2], [1], [1], [2], [0, 0, 0, 1, 1, 2], [0], [0]>} : vector<4x8x8xf32>, vector<4x8x8xf32>, vector<4x8x8xf32> -> vector<4x8x8xf32>
    %cst_105 = arith.constant 0.000000e+00 : f32
    "tpu.trace_stop"() : () -> ()
    %348 = vector.broadcast %cst_105 : f32 to vector<8x32xf32>
    %349 = vector.extract_strided_slice %347 {offsets = [0, 0, 0], sizes = [1, 8, 8], strides = [1, 1, 1]} : vector<4x8x8xf32> to vector<1x8x8xf32>
    %350 = vector.shape_cast %349 : vector<1x8x8xf32> to vector<8x8xf32>
    %351 = vector.extract_strided_slice %223 {offsets = [0, 0], sizes = [8, 32], strides = [1, 1]} : vector<32x32xf32> to vector<8x32xf32>
    %cst_106 = arith.constant dense<0.000000e+00> : vector<8x32xf32>
    %352 = tpu.matmul %350, %351, %cst_106 {dimension_numbers = #tpu.dot_dimension_numbers<[1], [0], [0], [1], [0, 0, 1, 1], [], []>} : vector<8x8xf32>, vector<8x32xf32>, vector<8x32xf32> -> vector<8x32xf32>
    %353 = arith.addf %348, %352 : vector<8x32xf32>
    %354 = vector.extract_strided_slice %347 {offsets = [1, 0, 0], sizes = [1, 8, 8], strides = [1, 1, 1]} : vector<4x8x8xf32> to vector<1x8x8xf32>
    %355 = vector.shape_cast %354 : vector<1x8x8xf32> to vector<8x8xf32>
    %356 = vector.extract_strided_slice %223 {offsets = [8, 0], sizes = [8, 32], strides = [1, 1]} : vector<32x32xf32> to vector<8x32xf32>
    %cst_107 = arith.constant dense<0.000000e+00> : vector<8x32xf32>
    %357 = tpu.matmul %355, %356, %cst_107 {dimension_numbers = #tpu.dot_dimension_numbers<[1], [0], [0], [1], [0, 0, 1, 1], [], []>} : vector<8x8xf32>, vector<8x32xf32>, vector<8x32xf32> -> vector<8x32xf32>
    %358 = arith.addf %353, %357 : vector<8x32xf32>
    %359 = vector.extract_strided_slice %347 {offsets = [2, 0, 0], sizes = [1, 8, 8], strides = [1, 1, 1]} : vector<4x8x8xf32> to vector<1x8x8xf32>
    %360 = vector.shape_cast %359 : vector<1x8x8xf32> to vector<8x8xf32>
    %361 = vector.extract_strided_slice %223 {offsets = [16, 0], sizes = [8, 32], strides = [1, 1]} : vector<32x32xf32> to vector<8x32xf32>
    %cst_108 = arith.constant dense<0.000000e+00> : vector<8x32xf32>
    %362 = tpu.matmul %360, %361, %cst_108 {dimension_numbers = #tpu.dot_dimension_numbers<[1], [0], [0], [1], [0, 0, 1, 1], [], []>} : vector<8x8xf32>, vector<8x32xf32>, vector<8x32xf32> -> vector<8x32xf32>
    %363 = arith.addf %358, %362 : vector<8x32xf32>
    %364 = vector.extract_strided_slice %347 {offsets = [3, 0, 0], sizes = [1, 8, 8], strides = [1, 1, 1]} : vector<4x8x8xf32> to vector<1x8x8xf32>
    %365 = vector.shape_cast %364 : vector<1x8x8xf32> to vector<8x8xf32>
    %366 = vector.extract_strided_slice %223 {offsets = [24, 0], sizes = [8, 32], strides = [1, 1]} : vector<32x32xf32> to vector<8x32xf32>
    %cst_109 = arith.constant dense<0.000000e+00> : vector<8x32xf32>
    %367 = tpu.matmul %365, %366, %cst_109 {dimension_numbers = #tpu.dot_dimension_numbers<[1], [0], [0], [1], [0, 0, 1, 1], [], []>} : vector<8x8xf32>, vector<8x32xf32>, vector<8x32xf32> -> vector<8x32xf32>
    %368 = arith.addf %363, %367 : vector<8x32xf32>
    %369 = tpu.concatenate %300, %368 in 0 : vector<8x32xf32>, vector<8x32xf32> -> vector<16x32xf32>
    %370 = arith.addf %369, %221 : vector<16x32xf32>
    %c1_110 = arith.constant 1 : index
    %c0_111 = arith.constant 0 : index
    %c0_112 = arith.constant 0 : index
    %371 = vector.load %arg8[%c1_110, %c0_111, %c0_112] : memref<2x1x32xf32, #tpu.memory_space<vmem>>, vector<1x1x32xf32>
    %372 = vector.shape_cast %371 : vector<1x1x32xf32> to vector<1x32xf32>
    %c1_113 = arith.constant 1 : index
    %c0_114 = arith.constant 0 : index
    %c0_115 = arith.constant 0 : index
    %373 = vector.load %arg9[%c1_113, %c0_114, %c0_115] : memref<2x1x32xf32, #tpu.memory_space<vmem>>, vector<1x1x32xf32>
    %374 = vector.shape_cast %373 : vector<1x1x32xf32> to vector<1x32xf32>
    %cst_116 = arith.constant dense<0.000000e+00> : vector<16xf32>
    %375 = vector.multi_reduction <add>, %370, %cst_116 [1] : vector<16x32xf32> to vector<16xf32>
    %376 = vector.shape_cast %375 : vector<16xf32> to vector<16x1xf32>
    %cst_117 = arith.constant 3.200000e+01 : f32
    %377 = vector.broadcast %cst_117 : f32 to vector<16x1xf32>
    %378 = arith.divf %376, %377 : vector<16x1xf32>
    %379 = vector.broadcast %378 : vector<16x1xf32> to vector<16x32xf32>
    %380 = arith.subf %370, %379 : vector<16x32xf32>
    %381 = arith.mulf %380, %380 : vector<16x32xf32>
    %cst_118 = arith.constant dense<0.000000e+00> : vector<16xf32>
    %382 = vector.multi_reduction <add>, %381, %cst_118 [1] : vector<16x32xf32> to vector<16xf32>
    %383 = vector.shape_cast %382 : vector<16xf32> to vector<16x1xf32>
    %cst_119 = arith.constant 3.200000e+01 : f32
    %384 = vector.broadcast %cst_119 : f32 to vector<16x1xf32>
    %385 = arith.divf %383, %384 : vector<16x1xf32>
    %386 = vector.broadcast %378 : vector<16x1xf32> to vector<16x32xf32>
    %387 = arith.subf %370, %386 : vector<16x32xf32>
    %cst_120 = arith.constant 9.99999974E-6 : f32
    %388 = vector.broadcast %cst_120 : f32 to vector<16x1xf32>
    %389 = arith.addf %385, %388 : vector<16x1xf32>
    %390 = math.rsqrt %389 : vector<16x1xf32>
    %391 = vector.broadcast %390 : vector<16x1xf32> to vector<16x32xf32>
    %392 = arith.mulf %387, %391 : vector<16x32xf32>
    %393 = vector.broadcast %372 : vector<1x32xf32> to vector<16x32xf32>
    %394 = arith.mulf %392, %393 : vector<16x32xf32>
    %395 = vector.broadcast %374 : vector<1x32xf32> to vector<16x32xf32>
    %396 = arith.addf %394, %395 : vector<16x32xf32>
    %c1_121 = arith.constant 1 : index
    %c0_122 = arith.constant 0 : index
    %c0_123 = arith.constant 0 : index
    %397 = vector.load %arg10[%c1_121, %c0_122, %c0_123] : memref<2x32x64xf32, #tpu.memory_space<vmem>>, vector<1x32x64xf32>
    %398 = vector.shape_cast %397 : vector<1x32x64xf32> to vector<32x64xf32>
    %cst_124 = arith.constant dense<0.000000e+00> : vector<16x64xf32>
    %399 = tpu.matmul %396, %398, %cst_124 {dimension_numbers = #tpu.dot_dimension_numbers<[1], [0], [0], [1], [0, 0, 1, 1], [], []>} : vector<16x32xf32>, vector<32x64xf32>, vector<16x64xf32> -> vector<16x64xf32>
    %cst_125 = arith.constant 0.000000e+00 : f32
    %400 = vector.broadcast %cst_125 : f32 to vector<16x64xf32>
    %401 = arith.maximumf %399, %400 : vector<16x64xf32>
    %c1_126 = arith.constant 1 : index
    %c0_127 = arith.constant 0 : index
    %c0_128 = arith.constant 0 : index
    %402 = vector.load %arg11[%c1_126, %c0_127, %c0_128] : memref<2x64x32xf32, #tpu.memory_space<vmem>>, vector<1x64x32xf32>
    %403 = vector.shape_cast %402 : vector<1x64x32xf32> to vector<64x32xf32>
    %cst_129 = arith.constant dense<0.000000e+00> : vector<16x32xf32>
    %404 = tpu.matmul %401, %403, %cst_129 {dimension_numbers = #tpu.dot_dimension_numbers<[1], [0], [0], [1], [0, 0, 1, 1], [], []>} : vector<16x64xf32>, vector<64x32xf32>, vector<16x32xf32> -> vector<16x32xf32>
    %405 = arith.addf %404, %396 : vector<16x32xf32>
    %c1_130 = arith.constant 1 : index
    %c0_131 = arith.constant 0 : index
    %c0_132 = arith.constant 0 : index
    %406 = vector.load %arg12[%c1_130, %c0_131, %c0_132] : memref<2x1x32xf32, #tpu.memory_space<vmem>>, vector<1x1x32xf32>
    %407 = vector.shape_cast %406 : vector<1x1x32xf32> to vector<1x32xf32>
    %c1_133 = arith.constant 1 : index
    %c0_134 = arith.constant 0 : index
    %c0_135 = arith.constant 0 : index
    %408 = vector.load %arg13[%c1_133, %c0_134, %c0_135] : memref<2x1x32xf32, #tpu.memory_space<vmem>>, vector<1x1x32xf32>
    %409 = vector.shape_cast %408 : vector<1x1x32xf32> to vector<1x32xf32>
    %cst_136 = arith.constant dense<0.000000e+00> : vector<16xf32>
    %410 = vector.multi_reduction <add>, %405, %cst_136 [1] : vector<16x32xf32> to vector<16xf32>
    %411 = vector.shape_cast %410 : vector<16xf32> to vector<16x1xf32>
    %cst_137 = arith.constant 3.200000e+01 : f32
    %412 = vector.broadcast %cst_137 : f32 to vector<16x1xf32>
    %413 = arith.divf %411, %412 : vector<16x1xf32>
    %414 = vector.broadcast %413 : vector<16x1xf32> to vector<16x32xf32>
    %415 = arith.subf %405, %414 : vector<16x32xf32>
    %416 = arith.mulf %415, %415 : vector<16x32xf32>
    %cst_138 = arith.constant dense<0.000000e+00> : vector<16xf32>
    %417 = vector.multi_reduction <add>, %416, %cst_138 [1] : vector<16x32xf32> to vector<16xf32>
    %418 = vector.shape_cast %417 : vector<16xf32> to vector<16x1xf32>
    %cst_139 = arith.constant 3.200000e+01 : f32
    %419 = vector.broadcast %cst_139 : f32 to vector<16x1xf32>
    %420 = arith.divf %418, %419 : vector<16x1xf32>
    %421 = vector.broadcast %413 : vector<16x1xf32> to vector<16x32xf32>
    %422 = arith.subf %405, %421 : vector<16x32xf32>
    %cst_140 = arith.constant 9.99999974E-6 : f32
    %423 = vector.broadcast %cst_140 : f32 to vector<16x1xf32>
    %424 = arith.addf %420, %423 : vector<16x1xf32>
    %425 = math.rsqrt %424 : vector<16x1xf32>
    %426 = vector.broadcast %425 : vector<16x1xf32> to vector<16x32xf32>
    %427 = arith.mulf %422, %426 : vector<16x32xf32>
    %428 = vector.broadcast %407 : vector<1x32xf32> to vector<16x32xf32>
    %429 = arith.mulf %427, %428 : vector<16x32xf32>
    %430 = vector.broadcast %409 : vector<1x32xf32> to vector<16x32xf32>
    %431 = arith.addf %429, %430 : vector<16x32xf32>
    %c0_141 = arith.constant 0 : index
    %c0_142 = arith.constant 0 : index
    %432 = vector.load %arg14[%c0_141, %c0_142] : memref<16x32xf32, #tpu.memory_space<vmem>>, vector<16x32xf32>
    tpu.vector_store %arg14[%c0_141, %c0_142], %431 {strides = array<i32>} : memref<16x32xf32, #tpu.memory_space<vmem>>, vector<16x32xf32>,
    return
  }
}

</mosaic_0001>

<bundles_post_ra>
// kernel: tpu_custom_call.1
= control target key start
LH: loop header
LB: loop body
LE: loop exit
PB: predicated region body
PF: predicated region fallthrough
CT: control target
= control target key end

     0   :  { %19 = vsyncpa [#allocation3], 0  ;;  %s6833_s0 = inlined_call_operand.vmem [shape: s32[16,1], index: 0, kind: input, shape index: {}]   ;;  %s6834_s1 = inlined_call_operand.vmem [shape: s32[2,8], index: 1, kind: input, shape index: {}]   ;;  %s6835_s2 = inlined_call_operand.vmem [shape: f32[50,32], index: 2, kind: input, shape index: {}]   ;;  %s6836_s3 = inlined_call_operand.hbm [shape: f32[8,32], index: 3, kind: input, shape index: {}]   ;;  %s6837_s4 = inlined_call_operand.vmem [shape: f32[2,32,32], index: 4, kind: input, shape index: {}]   ;;  %s6838_s5 = inlined_call_operand.vmem [shape: f32[2,32,32], index: 5, kind: input, shape index: {}]   ;;  %s6839_s6 = inlined_call_operand.vmem [shape: f32[2,32,32], index: 6, kind: input, shape index: {}]   ;;  %s6840_s7 = inlined_call_operand.vmem [shape: f32[2,32,32], index: 7, kind: input, shape index: {}]   ;;  %s6841_s8 = inlined_call_operand.vmem [shape: f32[2,1,32], index: 8, kind: input, shape index: {}]   ;;  %s6842_s9 = inlined_call_operand.vmem [shape: f32[2,1,32], index: 9, kind: input, shape index: {}]   ;;  %s6843_s10 = inlined_call_operand.hbm [shape: f32[2,32,64], index: 10, kind: input, shape index: {}]   ;;  %s6844_s11 = inlined_call_operand.vmem [shape: f32[2,64,32], index: 11, kind: input, shape index: {}]   ;;  %s6845_s12 = inlined_call_operand.vmem [shape: f32[2,1,32], index: 12, kind: input, shape index: {}]   ;;  %s6846_s13 = inlined_call_operand.vmem [shape: f32[2,1,32], index: 13, kind: input, shape index: {}]   ;;  %s6847_s14 = inlined_call_operand.hbm [shape: f32[16,32], index: 14, kind: output, shape index: {}]  }
   0x1   :  { %20 = vsyncpa [#allocation6], 0 }
   0x2   :  { %21 = vsyncpa [#allocation4], 0  ;;  %s6026_s29 = smov [#allocation2]   ;;  %s6027_s15 = smov [#allocation5]  }
   0x3   :  { %s34_s30 = sshll.u32 %s6026_s29, 4  ;;  %s55_s16 = sshll.u32 %s6027_s15, 4  ;;  %s35_s30 = int_to_ptr.vmem [resolvable:$true] %s34_s30  ;;  %s6112_s16 = int_to_ptr.vmem [resolvable:$true] %s55_s16 }
   0x4   :  { %s5954_s19 = scalar_lea.hbm %s6836_s3, 128 }
   0x5   :  { %p5955_p0 = scmp.ne.s32.totalorder %s6836_s3, %s5954_s19  ;;  %p5958_p1 = scmp.lt.u32.totalorder %s5954_s19, %s6836_s3 }
   0x7   :  { %p5960_p2 = pnand %p5958_p1, %p5955_p0 }
   0x9   :  { %5963 = shalt.err (!%p5960_p2)
}
   0xa   :  { %s5964_s24 = scalar_lea.vmem %s35_s30, 128  ;;  %p5969_p4 = scmp.lt.s32.totalorder %s35_s30, %s35_s30 }
   0xb   :  { %p5965_p3 = scmp.ne.s32.totalorder %s35_s30, %s5964_s24  ;;  %p5970_p5 = scmp.lt.s32.totalorder %s5964_s24, %s5964_s24 }
   0xd   :  { %p5971_p6 = por %p5970_p5, %p5969_p4 }
   0xf   :  { %p5972_p7 = pnand %p5971_p6, %p5965_p3 }
  0x11   :  { %5975 = shalt.err (!%p5972_p7)
}
  0x12   :  { %37 = dma.hbm_to_vmem [thread:$0]  %s6836_s3, 128, %s35_s30, [#allocation3]  }
  0x13   :  { %s5976_s29 = scalar_lea.hbm %s6843_s10, 1024 }
  0x14   :  { %p5977_p8 = scmp.ne.s32.totalorder %s6843_s10, %s5976_s29  ;;  %p5980_p9 = scmp.lt.u32.totalorder %s5976_s29, %s6843_s10 }
  0x16   :  { %p5982_p10 = pnand %p5980_p9, %p5977_p8 }
  0x18   :  { %5985 = shalt.err (!%p5982_p10)
}
  0x19   :  { %s5986_s20 = scalar_lea.vmem %s6112_s16, 1024  ;;  %p5991_p12 = scmp.lt.s32.totalorder %s6112_s16, %s6112_s16 }
  0x1a   :  { %p5987_p11 = scmp.ne.s32.totalorder %s6112_s16, %s5986_s20  ;;  %p5992_p13 = scmp.lt.s32.totalorder %s5986_s20, %s5986_s20 }
  0x1c   :  { %p5993_p0 = por %p5992_p13, %p5991_p12 }
  0x1e   :  { %p5994_p1 = pnand %p5993_p0, %p5987_p11 }
  0x20   :  { %5997 = shalt.err (!%p5994_p1)
}
  0x21   :  { %s6028_s3 = smov 128   ;;  %s6029_s30 = smov 8  }
  0x22   :  { %61 = dma.hbm_to_vmem [thread:$0]  %s6843_s10, 1024, %s6112_s16, [#allocation6], %s6028_s3, %s6028_s3, %s6029_s30  }
  0x23   :  { %6020 = dma.done.wait [#allocation3], 128  }
  0x24   :  { %6021 = vsyncadd [#allocation3], 4294967168 }
  0x25   :  { %6022 = dma.done.wait [#allocation6], 1024  }
  0x26   :  { %6023 = vsyncadd [#allocation6], 4294966272  ;;  %v76_v0 = vlaneseq  ;;  %v6030_v1 = vmov 0   ;;  %v184_v5 = vld [vmem:[%s6834_s1] sm:$0x3]  ;;  %v91_v8 = vld [vmem:[%s6835_s2 + $0x8] sm:$0xff] }
  0x27   :  { %5873 = vset.pattern.permute.xlu0 %v6030_v1  ;;  %v74_v6 = vld [vmem:[%s6833_s0] sm:$0xff]  ;;  %vm754_vm0 = vcmp.eq.s32.totalorder %v184_v5, 0  ;;  %v92_v9 = vld [vmem:[%s6835_s2 + $0x10] sm:$0xff]  ;;  %v75_v11 = vld [vmem:[%s6833_s0 + $0x8] sm:$0xff]  ;;  %vm105_vm1 = vcmask 1041408   ;;  %vm98_vm2 = vcmask 408576  }
  0x28   :  { %v757_v2 = vshrl.u32 %v76_v0, 7  ;;  %79 = vperm.xlu0 %5873, %v74_v6   ;;  %v90_v7 = vld [vmem:[%s6835_s2] sm:$0xff]  ;;  %v755_v10 = vsel %vm754_vm0, 1, %v6030_v1  ;;  %v93_v13 = vld [vmem:[%s6835_s2 + $0x18] sm:$0xff]  ;;  %v95_v18 = vld [vmem:[%s6835_s2 + $0x28] sm:$0xff]  ;;  %v77_v27 = vand.u32 127, %v76_v0 }
  0x29   :  { %v5754_v12 = vpack.c.bf16 %v91_v8, %v90_v7  ;;  %v5758_v16 = vpack.c.bf16 %v93_v13, %v92_v9  ;;  %v94_v17 = vld [vmem:[%s6835_s2 + $0x20] sm:$0xff]  ;;  %v190_v21 = vld [vmem:[%s6837_s4 + $0x8] sm:$0xff]  ;;  %v96_v23 = vld [vmem:[%s6835_s2 + $0x30] sm:$0x3]  ;;  %v6031_v29 = vmov 0.0   ;;  %vm193_vm5 = vcmask 261120  }
  0x2a   :  { %v758_v3 = vsub.s32 0, %v757_v2  ;;  %v1717_v4 = vsub.s32 1, %v757_v2  ;;  %v5762_v19 = vpack.c.bf16 %v95_v18, %v94_v17  ;;  %v189_v20 = vld [vmem:[%s6837_s4] sm:$0xff]  ;;  %v355_v25 = vld [vmem:[%s6839_s6 + $0x8] sm:$0xff]  ;;  %v191_v33 = vld [vmem:[%s6837_s4 + $0x10] sm:$0xff]  ;;  %vm6032_vm6 = vmmov 0  }
  0x2b   :  { %5755 = vmatprep.subr.bf16.mxu0 %v5754_v12  ;;  %v5766_v22 = vpack.c.bf16 %v190_v21, %v189_v20  ;;  %v354_v24 = vld [vmem:[%s6839_s6] sm:$0xff]  ;;  %v192_v34 = vld [vmem:[%s6837_s4 + $0x18] sm:$0xff]  ;;  %v356_v36 = vld [vmem:[%s6839_s6 + $0x10] sm:$0xff]  ;;  %vm457_vm7 = vcmask 64512   ;;  %s6033_s28 = smov 112   ;;  %s6034_s29 = smov 120  }
  0x2c   :  { %v6167_v14 = vrot.slane %v755_v10, %v758_v3  ;;  %v6169_v15 = vrot.slane %v755_v10, %v1717_v4  ;;  %82 = vperm.xlu0 %5873, %v75_v11   ;;  %5757 = vmatpush3.bf16.msra.mxu0 %v5754_v12  ;;  %v5782_v26 = vpack.c.bf16 %v355_v25, %v354_v24  ;;  %v357_v37 = vld [vmem:[%s6839_s6 + $0x18] sm:$0xff]  ;;  %v275_v39 = vld [vmem:[%s6838_s5] sm:$0xff]  ;;  %v276_v40 = vld [vmem:[%s6838_s5 + $0x8] sm:$0xff]  ;;  %s6035_s15 = smov 104   ;;  %vm2496_vm10 = vcmask 523264   ;;  %s6036_s25 = smov [#allocation7]  }
  0x2d   :  { %5759 = vmatprep.subr.bf16.mxu0 %v5758_v16  ;;  %5767 = vmatprep.subr.bf16.mxu1 %v5766_v22  ;;  %v5770_v35 = vpack.c.bf16 %v192_v34, %v191_v33  ;;  %v5786_v38 = vpack.c.bf16 %v357_v37, %v356_v36  ;;  %v5774_v41 = vpack.c.bf16 %v276_v40, %v275_v39  ;;  %v97_v42 = vld [vmem:[#allocation2] sm:$0xff]  ;;  %v277_v44 = vld [vmem:[%s6838_s5 + $0x10] sm:$0xff]  ;;  %v278_v45 = vld [vmem:[%s6838_s5 + $0x18] sm:$0xff]  ;;  %s5060_s26 = sshll.u32 %s6036_s25, 4  ;;  %s5061_s26 = int_to_ptr.vmem [resolvable:$true] %s5060_s26 }
  0x2e   :  { %5769 = vmatpush3.bf16.msra.mxu1 %v5766_v22  ;;  %v5778_v49 = vpack.c.bf16 %v278_v45, %v277_v44  ;;  %vm760_vm8 = vcmp.eq.s32.totalorder %v6167_v14, 1  ;;  %vm1719_vm9 = vcmp.eq.s32.totalorder %v6169_v15, 1  ;;  %p6003_p3 = scmp.lt.s32.totalorder %s5061_s26, %s5061_s26 }
  0x2f   :  { %5771 = vmatprep.subr.bf16.mxu1 %v5770_v35 }
  0x30   :  { %5761 = vmatpush3.bf16.msra.mxu0 %v5758_v16 }
  0x31   :  { %5763 = vmatprep.subr.bf16.mxu0 %v5762_v19 }
  0x32   :  { %5773 = vmatpush3.bf16.msra.mxu1 %v5770_v35 }
  0x33   :  { %5775 = vmatprep.subr.bf16.mxu1 %v5774_v41 }
  0x34   :  { %5765 = vmatpush3.bf16.msra.mxu0 %v5762_v19 }
  0x35   :  { %5383 = vmatprep.subr.msk.mxu0 %vm105_vm1, %v96_v23 }
  0x38   :  { %5384 = vmatpush3.msk.msra.mxu0 %vm105_vm1, %v96_v23 }
  0x39   :  { %5783 = vmatprep.subr.bf16.mxu0 %v5782_v26 }
  0xa7   :  { %v80_v28 = vpop.permute.xlu0 %79 }
  0xa8   :  { %vm84_vm3 = vcmp.eq.s32.totalorder %v80_v28, %v77_v27 }
  0xa9   :  { %v5073_v30 = vsel %vm84_vm3, 1.0, %v6031_v29 }
  0xaa   :  { %5385 = vmatprep.mubr.msk.f32.mxu0 %vm98_vm2, %v5073_v30 }
  0xab   :  { %v83_v31 = vpop.permute.xlu0 %82 }
  0xac   :  { %vm85_vm4 = vcmp.eq.s32.totalorder %v83_v31, %v77_v27 }
  0xad   :  { %v5074_v32 = vsel %vm85_vm4, 1.0, %v6031_v29 }
  0xae   :  { %5386 = vmatmul.mubr.msk.f32.vlgmr.msra.gmra.mrb[0].mxu0 %vm98_vm2, %v5074_v32 }
  0xaf   :  { %5785 = vmatpush3.bf16.msra.mxu0 %v5782_v26 }
  0xb0   :  { %5787 = vmatprep.subr.bf16.mxu0 %v5786_v38 }
  0xb3   :  { %5789 = vmatpush3.bf16.msra.mxu0 %v5786_v38 }
  0xb4   :  { %5421 = vmatprep.subr.mxu0 %v6031_v29 }
 0x181   :  { %v5387_v43 = vpop.f32.mrb[0].mxu0 }
 0x182   :  { %v175_v46 = vpop.f32.mrb[1].mxu0  ;;  %v6221_v48 = vadd.f32 %v5387_v43, %v97_v42 }
 0x183   :  { %v6219_v47 = vadd.f32 %v175_v46, %v97_v42 }
 0x185   :  { %5396 = vmatprep.mubr.msk.f32.mxu1 %vm193_vm5, %v6219_v47  ;;  %5418 = vmatprep.mubr.msk.f32.mxu0 %vm193_vm5, %v6219_v47 }
 0x186   :  { %5397 = vmatmul.mubr.msk.f32.vlgmr.msra.gmra.mrb[0].mxu1 %vm193_vm5, %v6221_v48  ;;  %5419 = vmatmul.mubr.msk.f32.vlgmr.msra.gmra.mrb[2].mxu0 %vm193_vm5, %v6221_v48 }
 0x187   :  { %5777 = vmatpush3.bf16.msra.mxu1 %v5774_v41  ;;  %5407 = vmatprep.mubr.msk.f32.mxu1 %vm193_vm5, %v6219_v47 }
 0x188   :  { %5779 = vmatprep.subr.bf16.mxu1 %v5778_v49  ;;  %5423 = vmatprep.mubr.msk.f32.mxu0 %vm6032_vm6, %v6031_v29 }
 0x18b   :  { %5781 = vmatpush3.bf16.msra.mxu1 %v5778_v49 }
 0x18c   :  { %5426 = vmatprep.subr.mxu1 %v6031_v29 }
 0x18e   :  { %5408 = vmatmul.mubr.msk.f32.vlgmr.msra.gmra.mrb[2].mxu1 %vm193_vm5, %v6221_v48 }
 0x18f   :  { %5428 = vmatprep.mubr.msk.f32.mxu1 %vm6032_vm6, %v6031_v29 }
 0x259   :  { %v6240_v50 = vpop.f32.mrb[0].mxu1  ;;  %v6242_v51 = vpop.f32.mrb[2].mxu0 }
 0x25a   :  { %v266_v52 = vpop.f32.mrb[1].mxu1  ;;  %v6244_v53 = vpop.f32.mrb[3].mxu0 }
 0x261   :  { %v6246_v54 = vpop.f32.mrb[2].mxu1 }
 0x262   :  { %v345_v55 = vpop.f32.mrb[3].mxu1 }
 0x263   :  { %443 = vrot.lane.b32.xlu0 %v345_v55, %s6033_s28  ;;  %441 = vrot.lane.b32.xlu1 %v345_v55, %s6034_s29 }
 0x264   :  { %5422 = vmatpush3.xpose.msk.msra.mxu0 %vm457_vm7, %v345_v55 }
 0x265   :  { %5431 = vmatprep.subr.mxu0 %v6031_v29 }
 0x267   :  { %5424 = vmatmul.mubr.msk.f32.vlgmr.msra.gmra.mrb[4].mxu0 %vm457_vm7, %v266_v52  ;;  %436 = vrot.lane.b32.xlu0 %v266_v52, %s6033_s28 }
 0x268   :  { %434 = vrot.lane.b32.xlu1 %v266_v52, %s6034_s29  ;;  %5433 = vmatprep.mubr.msk.f32.mxu0 %vm6032_vm6, %v6031_v29 }
 0x26c   :  { %445 = vrot.lane.b32.xlu1 %v345_v55, %s6035_s15  ;;  %v6320_v55 = vld [vmem:[%s6840_s7 + $0x8] sm:$0xff] }
 0x270   :  { %438 = vrot.lane.b32.xlu1 %v266_v52, %s6035_s15 }
 0x2d5   :  { %v444_v56 = vpop.permute.xlu0 %443  ;;  %v442_v57 = vpop.permute.xlu1 %441 }
 0x2d6   :  { %5427 = vmatpush3.xpose.msk.msra.mxu1 %vm457_vm7, %v442_v57  ;;  %5432 = vmatpush3.xpose.msk.msra.mxu0 %vm457_vm7, %v444_v56 }
 0x2d7   :  { %5441 = vmatprep.subr.mxu0 %v6031_v29  ;;  %5436 = vmatprep.subr.mxu1 %v6031_v29 }
 0x2d9   :  { %v437_v58 = vpop.permute.xlu0 %436 }
 0x2da   :  { %v435_v59 = vpop.permute.xlu1 %434  ;;  %5434 = vmatmul.mubr.msk.f32.vlgmr.msra.gmra.mrb[6].mxu0 %vm457_vm7, %v437_v58  ;;  %v6333_v58 = vld [vmem:[%s6840_s7] sm:$0xff] }
 0x2db   :  { %5429 = vmatmul.mubr.msk.f32.vlgmr.msra.gmra.mrb[4].mxu1 %vm457_vm7, %v435_v59  ;;  %5442 = vmatpush3.msra.mxu0 %v6244_v53  ;;  %v6343_v59 = vld [vmem:[%s6840_s7 + $0x18] sm:$0xff] }
 0x2dc   :  { %5438 = vmatprep.mubr.msk.f32.mxu1 %vm6032_vm6, %v6031_v29  ;;  %5443 = vmatprep.mubr.msk.f32.mxu0 %vm6032_vm6, %v6031_v29 }
 0x2dd   :  { %5451 = vmatprep.subr.mxu0 %v6031_v29 }
 0x2de   :  { %v446_v60 = vpop.permute.xlu1 %445 }
 0x2df   :  { %5437 = vmatpush3.xpose.msk.msra.mxu1 %vm457_vm7, %v446_v60 }
 0x2e0   :  { %5446 = vmatprep.subr.mxu1 %v6031_v29 }
 0x2e2   :  { %v439_v61 = vpop.permute.xlu1 %438 }
 0x2e3   :  { %5439 = vmatmul.mubr.msk.f32.vlgmr.msra.gmra.mrb[6].mxu1 %vm457_vm7, %v439_v61 }
 0x2e4   :  { %5448 = vmatprep.mubr.msk.f32.mxu1 %vm6032_vm6, %v6031_v29 }
 0x33a   :  { %v528_v62 = vpop.f32.mrb[4].mxu0 }
 0x33b   :  { %v761_v63 = vsel %vm760_vm8, -1e+09, %v528_v62  ;;  %v5425_v0 = vpop.f32.mrb[5].mxu0  ;;  %v6353_v62 = vld [vmem:[%s6840_s7 + $0x10] sm:$0xff] }
 0x33c   :  { %v765_v1 = vsel %vm457_vm7, %v761_v63, -inf }
 0x33d   :  { %766 = vmax.xlane.f32.xlu0 %v765_v1 }
 0x3ad   :  { %v676_v2 = vpop.f32.mrb[6].mxu0 }
 0x3ae   :  { %v602_v3 = vpop.f32.mrb[4].mxu1  ;;  %v763_v4 = vsel %vm760_vm8, -1e+09, %v676_v2  ;;  %v5435_v5 = vpop.f32.mrb[7].mxu0 }
 0x3af   :  { %v762_v6 = vsel %vm760_vm8, -1e+09, %v602_v3  ;;  %v5430_v7 = vpop.f32.mrb[5].mxu1  ;;  %v771_v8 = vsel %vm457_vm7, %v763_v4, -inf }
 0x3b0   :  { %v768_v9 = vsel %vm457_vm7, %v762_v6, -inf  ;;  %772 = vmax.xlane.f32.xlu0 %v771_v8 }
 0x3b1   :  { %769 = vmax.xlane.f32.xlu1 %v768_v9 }
 0x3b6   :  { %v750_v10 = vpop.f32.mrb[6].mxu1 }
 0x3b7   :  { %v764_v11 = vsel %vm760_vm8, -1e+09, %v750_v10  ;;  %v5440_v12 = vpop.f32.mrb[7].mxu1 }
 0x3b8   :  { %v774_v13 = vsel %vm457_vm7, %v764_v11, -inf }
 0x3b9   :  { %775 = vmax.xlane.f32.xlu0 %v774_v13 }
 0x3c2   :  { %448 = vrot.lane.b32.xlu1 %v6244_v53, %s6034_s29 }
 0x3ca   :  { %v767_v16 = vpop.xlane.xlu0 %766 }
 0x3cb   :  { %v777_v17 = vsub.f32 %v761_v63, %v767_v16 }
 0x3cd   :  { %v781_v18 = vmul.f32 1.442695, %v777_v17 }
 0x3cf   :  { %5874 = vpow2.f32 %v781_v18 }
 0x3d9   :  { %v5875_v19 = vpop.eup %5874 }
 0x3da   :  { %v789_v20 = vsel %vm457_vm7, %v5875_v19, 0.0 }
 0x3e6   :  { %790 = vadd.xlane.f32.xlu1 %v789_v20 }
 0x43d   :  { %v773_v21 = vpop.xlane.xlu0 %772 }
 0x43e   :  { %v770_v22 = vpop.xlane.xlu1 %769  ;;  %v779_v23 = vsub.f32 %v763_v4, %v773_v21 }
 0x43f   :  { %v778_v24 = vsub.f32 %v762_v6, %v770_v22 }
 0x440   :  { %v785_v25 = vmul.f32 1.442695, %v779_v23 }
 0x441   :  { %v783_v26 = vmul.f32 1.442695, %v778_v24 }
 0x442   :  { %5876 = vpow2.f32 %v785_v25  ;;  %v449_v27 = vpop.permute.xlu1 %448 }
 0x443   :  { %5878 = vpow2.f32 %v783_v26  ;;  %5447 = vmatpush3.msra.mxu1 %v449_v27 }
 0x444   :  { %5456 = vmatprep.subr.mxu1 %v6031_v29 }
 0x446   :  { %v776_v28 = vpop.xlane.xlu0 %775 }
 0x447   :  { %v780_v30 = vsub.f32 %v764_v11, %v776_v28 }
 0x449   :  { %v787_v31 = vmul.f32 1.442695, %v780_v30 }
 0x44b   :  { %5880 = vpow2.f32 %v787_v31 }
 0x44c   :  { %v5877_v32 = vpop.eup %5876 }
 0x44d   :  { %v5879_v33 = vpop.eup %5878  ;;  %v795_v34 = vsel %vm457_vm7, %v5877_v32, 0.0 }
 0x44e   :  { %v792_v35 = vsel %vm457_vm7, %v5879_v33, 0.0  ;;  %796 = vadd.xlane.f32.xlu1 %v795_v34 }
 0x44f   :  { %793 = vadd.xlane.f32.xlu0 %v792_v35 }
 0x455   :  { %v5881_v36 = vpop.eup %5880 }
 0x456   :  { %v798_v37 = vsel %vm457_vm7, %v5881_v36, 0.0 }
 0x457   :  { %799 = vadd.xlane.f32.xlu0 %v798_v37 }
 0x45f   :  { %454 = vrot.lane.b32.xlu1 %v6244_v53, %s6035_s15 }
 0x463   :  { %1403 = vrot.lane.b32.xlu1 %v6246_v54, %s6034_s29 }
 0x467   :  { %1405 = vrot.lane.b32.xlu1 %v6246_v54, %s6033_s28 }
 0x46b   :  { %1398 = vrot.lane.b32.xlu1 %v6240_v50, %s6033_s28 }
 0x46d   :  { %451 = vrot.lane.b32.xlu0 %v6244_v53, %s6033_s28 }
 0x471   :  { %1396 = vrot.lane.b32.xlu0 %v6240_v50, %s6034_s29 }
 0x473   :  { %v791_v38 = vpop.xlane.xlu1 %790 }
 0x474   :  { %5882 = vrcp.f32 %v791_v38 }
 0x475   :  { %1407 = vrot.lane.b32.xlu0 %v6246_v54, %s6035_s15 }
 0x479   :  { %1400 = vrot.lane.b32.xlu0 %v6240_v50, %s6035_s15 }
 0x47e   :  { %v5883_v39 = vpop.eup %5882 }
 0x47f   :  { %v805_v40 = vmul.f32 %v5883_v39, %v5875_v19 }
 0x481   :  { %5444 = vmatmul.mubr.msk.f32.vlgmr.msra.gmra.mrb[8].mxu0 %vm457_vm7, %v805_v40 }
 0x482   :  { %5453 = vmatprep.mubr.msk.f32.mxu0 %vm6032_vm6, %v6031_v29 }
 0x4db   :  { %v797_v41 = vpop.xlane.xlu1 %796 }
 0x4dc   :  { %5884 = vrcp.f32 %v797_v41  ;;  %v794_v42 = vpop.xlane.xlu0 %793 }
 0x4dd   :  { %5886 = vrcp.f32 %v794_v42 }
 0x4df   :  { %v455_v53 = vpop.permute.xlu1 %454 }
 0x4e3   :  { %v1404_v3 = vpop.permute.xlu1 %1403 }
 0x4e4   :  { %v800_v43 = vpop.xlane.xlu0 %799 }
 0x4e5   :  { %5888 = vrcp.f32 %v800_v43 }
 0x4e6   :  { %v5885_v44 = vpop.eup %5884 }
 0x4e7   :  { %v5887_v45 = vpop.eup %5886  ;;  %v807_v46 = vmul.f32 %v5885_v44, %v5877_v32  ;;  %v1406_v6 = vpop.permute.xlu1 %1405 }
 0x4e8   :  { %v806_v49 = vmul.f32 %v5887_v45, %v5879_v33  ;;  %v452_v52 = vpop.permute.xlu0 %451 }
 0x4e9   :  { %5452 = vmatpush3.msra.mxu0 %v452_v52 }
 0x4ea   :  { %5449 = vmatmul.mubr.msk.f32.vlgmr.msra.gmra.mrb[8].mxu1 %vm457_vm7, %v806_v49  ;;  %5454 = vmatmul.mubr.msk.f32.vlgmr.msra.gmra.mrb[10].mxu0 %vm457_vm7, %v807_v46 }
 0x4eb   :  { %5457 = vmatpush3.msra.mxu1 %v455_v53  ;;  %5458 = vmatprep.mubr.msk.f32.mxu1 %vm6032_vm6, %v6031_v29 }
 0x4ec   :  { %5466 = vmatprep.subr.mxu1 %v6031_v29  ;;  %5461 = vmatprep.subr.mxu0 %v6031_v29  ;;  %v1397_v4 = vpop.permute.xlu0 %1396 }
 0x4ed   :  { %5462 = vmatpush3.msra.mxu0 %v6320_v55  ;;  %5463 = vmatprep.mubr.msk.f32.mxu0 %vm6032_vm6, %v6031_v29 }
 0x4ee   :  { %5471 = vmatprep.subr.mxu0 %v6031_v29 }
 0x4ef   :  { %v5889_v56 = vpop.eup %5888 }
 0x4f0   :  { %v808_v57 = vmul.f32 %v5889_v56, %v5881_v36  ;;  %v1408_v8 = vpop.permute.xlu0 %1407 }
 0x4f2   :  { %5459 = vmatmul.mubr.msk.f32.vlgmr.msra.gmra.mrb[10].mxu1 %vm457_vm7, %v808_v57 }
 0x4f3   :  { %5467 = vmatpush3.msra.mxu1 %v6333_v58  ;;  %5468 = vmatprep.mubr.msk.f32.mxu1 %vm6032_vm6, %v6031_v29 }
 0x4f4   :  { %5476 = vmatprep.subr.mxu1 %v6031_v29  ;;  %v1401_v9 = vpop.permute.xlu0 %1400 }
 0x554   :  { %v878_v60 = vpop.f32.mrb[8].mxu0 }
 0x555   :  { %v5445_v61 = vpop.f32.mrb[9].mxu0  ;;  %5469 = vmatmul.mubr.msk.f32.vlgmr.msra.gmra.mrb[12].mxu1 %vm457_vm7, %v878_v60 }
 0x556   :  { %5477 = vmatpush3.msra.mxu1 %v6343_v59  ;;  %5478 = vmatprep.mubr.msk.f32.mxu1 %vm6032_vm6, %v6031_v29 }
 0x557   :  { %5486 = vmatprep.subr.mxu1 %v6031_v29 }
 0x5bd   :  { %v951_v63 = vpop.f32.mrb[8].mxu1  ;;  %v1024_v0 = vpop.f32.mrb[10].mxu0 }
 0x5be   :  { %v5450_v1 = vpop.f32.mrb[9].mxu1  ;;  %v5455_v2 = vpop.f32.mrb[11].mxu0  ;;  %5464 = vmatmul.mubr.msk.f32.vlgmr.msra.gmra.mrb[12].mxu0 %vm457_vm7, %v951_v63 }
 0x5bf   :  { %5472 = vmatpush3.msra.mxu0 %v6353_v62  ;;  %5473 = vmatprep.mubr.msk.f32.mxu0 %vm6032_vm6, %v6031_v29 }
 0x5c0   :  { %5481 = vmatprep.subr.mxu0 %v6031_v29 }
 0x5c2   :  { %5474 = vmatmul.mubr.msk.f32.vlgmr.msra.gmra.mrb[14].mxu0 %vm457_vm7, %v1024_v0 }
 0x5c3   :  { %5483 = vmatprep.mubr.msk.f32.mxu0 %vm6032_vm6, %v6031_v29 }
 0x5c5   :  { %v1097_v5 = vpop.f32.mrb[10].mxu1 }
 0x5c6   :  { %5482 = vmatpush3.xpose.msk.msra.mxu0 %vm457_vm7, %v6246_v54  ;;  %v5460_v7 = vpop.f32.mrb[11].mxu1  ;;  %5479 = vmatmul.mubr.msk.f32.vlgmr.msra.gmra.mrb[14].mxu1 %vm457_vm7, %v1097_v5  ;;  %v1399_v54 = vpop.permute.xlu1 %1398 }
 0x5c7   :  { %5487 = vmatpush3.xpose.msk.msra.mxu1 %vm457_vm7, %v1404_v3  ;;  %5491 = vmatprep.subr.mxu0 %v6031_v29 }
 0x5c8   :  { %5488 = vmatprep.mubr.msk.f32.mxu1 %vm6032_vm6, %v6031_v29  ;;  %5496 = vmatprep.subr.mxu1 %v6031_v29 }
 0x5c9   :  { %5484 = vmatmul.mubr.msk.f32.vlgmr.msra.gmra.mrb[16].mxu0 %vm457_vm7, %v6240_v50 }
 0x5ca   :  { %5492 = vmatpush3.xpose.msk.msra.mxu0 %vm457_vm7, %v1406_v6  ;;  %5489 = vmatmul.mubr.msk.f32.vlgmr.msra.gmra.mrb[16].mxu1 %vm457_vm7, %v1397_v4 }
 0x5cb   :  { %5497 = vmatpush3.xpose.msk.msra.mxu1 %vm457_vm7, %v1408_v8  ;;  %5493 = vmatprep.mubr.msk.f32.mxu0 %vm6032_vm6, %v6031_v29 }
 0x5cc   :  { %5501 = vmatprep.subr.mxu0 %v6031_v29  ;;  %5498 = vmatprep.mubr.msk.f32.mxu1 %vm6032_vm6, %v6031_v29 }
 0x5cd   :  { %5494 = vmatmul.mubr.msk.f32.vlgmr.msra.gmra.mrb[18].mxu0 %vm457_vm7, %v1399_v54  ;;  %5506 = vmatprep.subr.mxu1 %v6031_v29 }
 0x5ce   :  { %5502 = vmatpush3.msra.mxu0 %v6242_v51  ;;  %5499 = vmatmul.mubr.msk.f32.vlgmr.msra.gmra.mrb[18].mxu1 %vm457_vm7, %v1401_v9 }
 0x5cf   :  { %5503 = vmatprep.mubr.msk.f32.mxu0 %vm6032_vm6, %v6031_v29  ;;  %5511 = vmatprep.subr.mxu0 %v6031_v29 }
 0x5d0   :  { %5508 = vmatprep.mubr.msk.f32.mxu1 %vm6032_vm6, %v6031_v29 }
 0x628   :  { %v1243_v50 = vpop.f32.mrb[12].mxu1 }
 0x629   :  { %v5470_v10 = vpop.f32.mrb[13].mxu1 }
 0x691   :  { %v1170_v11 = vpop.f32.mrb[12].mxu0 }
 0x692   :  { %v1244_v12 = vadd.f32 %v1243_v50, %v1170_v11  ;;  %v5465_v13 = vpop.f32.mrb[13].mxu0 }
 0x695   :  { %v1316_v16 = vpop.f32.mrb[14].mxu0 }
 0x696   :  { %v1320_v17 = vadd.f32 %v1316_v16, %v1244_v12  ;;  %v5475_v18 = vpop.f32.mrb[15].mxu0 }
 0x699   :  { %v1390_v19 = vpop.f32.mrb[14].mxu1 }
 0x69a   :  { %v1394_v20 = vadd.f32 %v1390_v19, %v1320_v17  ;;  %v5480_v21 = vpop.f32.mrb[15].mxu1 }
 0x69c   :  { %v1489_v22 = vpop.f32.mrb[16].mxu0  ;;  %v2354_v4 = vadd.f32 %v1394_v20, %v6219_v47 }
 0x69d   :  { %v1720_v23 = vsel %vm1719_vm9, -1e+09, %v1489_v22  ;;  %v5485_v24 = vpop.f32.mrb[17].mxu0  ;;  %v1563_v25 = vpop.f32.mrb[16].mxu1 }
 0x69e   :  { %v1721_v26 = vsel %vm1719_vm9, -1e+09, %v1563_v25  ;;  %v5490_v27 = vpop.f32.mrb[17].mxu1  ;;  %v1724_v28 = vsel %vm457_vm7, %v1720_v23, -inf  ;;  %v2358_v5 = vsel %vm193_vm5, %v2354_v4, 0.0 }
 0x69f   :  { %1725 = vmax.xlane.f32.xlu1 %v1724_v28  ;;  %v1727_v30 = vsel %vm457_vm7, %v1721_v26, -inf }
 0x6a0   :  { %v1637_v31 = vpop.f32.mrb[18].mxu0  ;;  %1728 = vmax.xlane.f32.xlu0 %v1727_v30 }
 0x6a1   :  { %v1722_v32 = vsel %vm1719_vm9, -1e+09, %v1637_v31  ;;  %v5495_v33 = vpop.f32.mrb[19].mxu0  ;;  %v1711_v34 = vpop.f32.mrb[18].mxu1 }
 0x6a2   :  { %v1723_v35 = vsel %vm1719_vm9, -1e+09, %v1711_v34  ;;  %v5500_v36 = vpop.f32.mrb[19].mxu1  ;;  %v1730_v38 = vsel %vm457_vm7, %v1722_v32, -inf  ;;  %v5117_v34 = vld [vmem:[%s6842_s9] ss:$0 sm:$0xff] }
 0x6a3   :  { %v1733_v37 = vsel %vm457_vm7, %v1723_v35, -inf }
 0x6a4   :  { %1734 = vmax.xlane.f32.xlu1 %v1733_v37  ;;  %1731 = vmax.xlane.f32.xlu0 %v1730_v38 }
 0x72c   :  { %v1726_v39 = vpop.xlane.xlu1 %1725 }
 0x72d   :  { %v1736_v40 = vsub.f32 %v1720_v23, %v1726_v39  ;;  %v1729_v41 = vpop.xlane.xlu0 %1728 }
 0x72e   :  { %v1737_v42 = vsub.f32 %v1721_v26, %v1729_v41  ;;  %v6438_v26 = vld [vmem:[%s6841_s8] ss:$0 sm:$0xff] }
 0x72f   :  { %v1740_v43 = vmul.f32 1.442695, %v1736_v40 }
 0x730   :  { %v1742_v44 = vmul.f32 1.442695, %v1737_v42 }
 0x731   :  { %5890 = vpow2.f32 %v1740_v43  ;;  %v1735_v45 = vpop.xlane.xlu1 %1734  ;;  %v1732_v46 = vpop.xlane.xlu0 %1731 }
 0x732   :  { %5892 = vpow2.f32 %v1742_v44  ;;  %v1739_v49 = vsub.f32 %v1723_v35, %v1735_v45  ;;  %v1738_v52 = vsub.f32 %v1722_v32, %v1732_v46 }
 0x734   :  { %v1746_v53 = vmul.f32 1.442695, %v1739_v49  ;;  %v1744_v56 = vmul.f32 1.442695, %v1738_v52 }
 0x736   :  { %5894 = vpow2.f32 %v1746_v53 }
 0x737   :  { %5896 = vpow2.f32 %v1744_v56 }
 0x73b   :  { %v5891_v57 = vpop.eup %5890 }
 0x73c   :  { %v5893_v60 = vpop.eup %5892  ;;  %v1748_v61 = vsel %vm457_vm7, %v5891_v57, 0.0 }
 0x73d   :  { %1749 = vadd.xlane.f32.xlu0 %v1748_v61  ;;  %v1751_v63 = vsel %vm457_vm7, %v5893_v60, 0.0 }
 0x73e   :  { %1752 = vadd.xlane.f32.xlu1 %v1751_v63 }
 0x740   :  { %v5895_v0 = vpop.eup %5894 }
 0x741   :  { %v5897_v1 = vpop.eup %5896  ;;  %v1757_v2 = vsel %vm457_vm7, %v5895_v0, 0.0 }
 0x742   :  { %1758 = vadd.xlane.f32.xlu1 %v1757_v2  ;;  %v1754_v3 = vsel %vm457_vm7, %v5897_v1, 0.0  ;;  %v2402_v2 = vld [vmem:[#allocation5 + $0x8] sm:$0xff] }
 0x743   :  { %1755 = vadd.xlane.f32.xlu0 %v1754_v3 }
 0x753   :  { %1413 = vrot.lane.b32.xlu1 %v6242_v51, %s6033_s28 }
 0x757   :  { %1416 = vrot.lane.b32.xlu1 %v6242_v51, %s6035_s15 }
 0x759   :  { %1410 = vrot.lane.b32.xlu0 %v6242_v51, %s6034_s29 }
 0x778   :  { %2359 = vadd.xlane.f32.xlu0 %v2358_v5  ;;  %v2404_v5 = vld [vmem:[#allocation5 + $0x18] sm:$0xff] }
 0x7ca   :  { %v1750_v6 = vpop.xlane.xlu0 %1749 }
 0x7cb   :  { %5898 = vrcp.f32 %v1750_v6  ;;  %v1753_v7 = vpop.xlane.xlu1 %1752 }
 0x7cc   :  { %5900 = vrcp.f32 %v1753_v7  ;;  %v2489_v7 = vld [vmem:[%s6844_s11 + $0x8] sm:$0xff] }
 0x7cf   :  { %v1759_v8 = vpop.xlane.xlu1 %1758 }
 0x7d0   :  { %5902 = vrcp.f32 %v1759_v8  ;;  %v1756_v54 = vpop.xlane.xlu0 %1755  ;;  %v2490_v8 = vld [vmem:[%s6844_s11 + $0x10] sm:$0xff] }
 0x7d1   :  { %5904 = vrcp.f32 %v1756_v54 }
 0x7d3   :  { %v1414_v9 = vpop.permute.xlu1 %1413 }
 0x7d4   :  { %v1411_v50 = vpop.permute.xlu0 %1410 }
 0x7d5   :  { %v5899_v10 = vpop.eup %5898  ;;  %5507 = vmatpush3.msra.mxu1 %v1411_v50 }
 0x7d6   :  { %v5901_v11 = vpop.eup %5900  ;;  %v1764_v12 = vmul.f32 %v5899_v10, %v5891_v57  ;;  %5516 = vmatprep.subr.mxu1 %v6031_v29  ;;  %v2492_v10 = vld [vmem:[%s6844_s11 + $0x20] sm:$0xff] }
 0x7d7   :  { %v1765_v47 = vmul.f32 %v5901_v11, %v5893_v60  ;;  %v1417_v51 = vpop.permute.xlu1 %1416  ;;  %v2493_v11 = vld [vmem:[%s6844_s11 + $0x28] sm:$0xff] }
 0x7d8   :  { %5504 = vmatmul.mubr.msk.f32.vlgmr.msra.gmra.mrb[20].mxu0 %vm457_vm7, %v1764_v12  ;;  %v5806_v12 = vpack.c.bf16 %v2493_v11, %v2492_v10  ;;  %v5136_v11 = vld [vmem:[%s6838_s5 + $0x30] sm:$0xff] }
 0x7d9   :  { %5512 = vmatpush3.msra.mxu0 %v1414_v9  ;;  %5509 = vmatmul.mubr.msk.f32.vlgmr.msra.gmra.mrb[20].mxu1 %vm457_vm7, %v1765_v47  ;;  %v2491_v9 = vld [vmem:[%s6844_s11 + $0x18] sm:$0xff] }
 0x7da   :  { %v5903_v13 = vpop.eup %5902  ;;  %5517 = vmatpush3.msra.mxu1 %v1417_v51  ;;  %5513 = vmatprep.mubr.msk.f32.mxu0 %vm6032_vm6, %v6031_v29  ;;  %v5802_v50 = vpack.c.bf16 %v2491_v9, %v2490_v8  ;;  %v5123_v9 = vld [vmem:[%s6846_s13] ss:$0 sm:$0xff] }
 0x7db   :  { %v5905_v16 = vpop.eup %5904  ;;  %v1767_v17 = vmul.f32 %v5903_v13, %v5895_v0  ;;  %5518 = vmatprep.mubr.msk.f32.mxu1 %vm6032_vm6, %v6031_v29  ;;  %5521 = vmatprep.subr.mxu0 %v6031_v29 }
 0x7dc   :  { %v1766_v18 = vmul.f32 %v5905_v16, %v5897_v1  ;;  %5526 = vmatprep.subr.mxu1 %v6031_v29  ;;  %v2401_v1 = vld [vmem:[#allocation5] sm:$0xff] }
 0x7dd   :  { %5519 = vmatmul.mubr.msk.f32.vlgmr.msra.gmra.mrb[22].mxu1 %vm457_vm7, %v1767_v17  ;;  %v5790_v3 = vpack.c.bf16 %v2402_v2, %v2401_v1 }
 0x7de   :  { %5514 = vmatmul.mubr.msk.f32.vlgmr.msra.gmra.mrb[22].mxu0 %vm457_vm7, %v1766_v18  ;;  %5527 = vmatpush3.msra.mxu1 %v6333_v58 }
 0x7df   :  { %5522 = vmatpush3.msra.mxu0 %v6320_v55  ;;  %5528 = vmatprep.mubr.msk.f32.mxu1 %vm6032_vm6, %v6031_v29 }
 0x7e0   :  { %5523 = vmatprep.mubr.msk.f32.mxu0 %vm6032_vm6, %v6031_v29  ;;  %5531 = vmatprep.subr.mxu0 %v6031_v29 }
 0x7e1   :  { %5536 = vmatprep.subr.mxu1 %v6031_v29 }
 0x805   :  { %v2360_v19 = vpop.xlane.xlu0 %2359 }
 0x806   :  { %v2365_v20 = vmul.f32 0.03125, %v2360_v19 }
 0x808   :  { %v2367_v21 = vsub.f32 %v2354_v4, %v2365_v20  ;;  %v2403_v4 = vld [vmem:[#allocation5 + $0x10] sm:$0xff]  ;;  %v2494_v20 = vld [vmem:[%s6844_s11 + $0x30] sm:$0xff] }
 0x809   :  { %v5794_v6 = vpack.c.bf16 %v2404_v5, %v2403_v4 }
 0x80a   :  { %v2369_v22 = vmul.f32 %v2367_v21, %v2367_v21 }
 0x80c   :  { %v2371_v23 = vsel %vm193_vm5, %v2369_v22, 0.0 }
 0x80d   :  { %2372 = vadd.xlane.f32.xlu0 %v2371_v23 }
 0x89a   :  { %v2373_v58 = vpop.xlane.xlu0 %2372 }
 0x89b   :  { %v2377_v24 = vmul.f32 0.03125, %v2373_v58 }
 0x89d   :  { %v2379_v55 = vadd.f32 1e-05, %v2377_v24 }
 0x89f   :  { %5906 = vrsqrt.f32 %v2379_v55 }
 0x8a9   :  { %v5907_v25 = vpop.eup %5906 }
 0x8aa   :  { %v2383_v27 = vmul.f32 %v5907_v25, %v2367_v21  ;;  %v2495_v21 = vld [vmem:[%s6844_s11 + $0x38] sm:$0xff] }
 0x8ab   :  { %v1837_v28 = vpop.f32.mrb[20].mxu0  ;;  %v5810_v22 = vpack.c.bf16 %v2495_v21, %v2494_v20 }
 0x8ac   :  { %v5505_v30 = vpop.f32.mrb[21].mxu0  ;;  %5529 = vmatmul.mubr.msk.f32.vlgmr.msra.gmra.mrb[24].mxu1 %vm457_vm7, %v1837_v28  ;;  %v1910_v31 = vpop.f32.mrb[20].mxu1  ;;  %v2391_v33 = vmul.f32 %v6438_v26, %v2383_v27 }
 0x8ad   :  { %v5510_v32 = vpop.f32.mrb[21].mxu1  ;;  %5524 = vmatmul.mubr.msk.f32.vlgmr.msra.gmra.mrb[24].mxu0 %vm457_vm7, %v1910_v31  ;;  %5537 = vmatpush3.msra.mxu1 %v6343_v59 }
 0x8ae   :  { %5532 = vmatpush3.msra.mxu0 %v6353_v62  ;;  %5533 = vmatprep.mubr.msk.f32.mxu0 %vm6032_vm6, %v6031_v29  ;;  %v6453_v59 = vadd.f32 %v5117_v34, %v2391_v33 }
 0x8af   :  { %5538 = vmatprep.mubr.msk.f32.mxu1 %vm6032_vm6, %v6031_v29  ;;  %5791 = vmatprep.subr.bf16.mxu0 %v5790_v3 }
 0x8b0   :  { %v2056_v35 = vpop.f32.mrb[22].mxu1 }
 0x8b1   :  { %v1983_v36 = vpop.f32.mrb[22].mxu0  ;;  %v5520_v37 = vpop.f32.mrb[23].mxu1  ;;  %5539 = vmatmul.mubr.msk.f32.vlgmr.msra.gmra.mrb[26].mxu1 %vm457_vm7, %v2056_v35 }
 0x8b2   :  { %v5515_v38 = vpop.f32.mrb[23].mxu0  ;;  %5534 = vmatmul.mubr.msk.f32.vlgmr.msra.gmra.mrb[26].mxu0 %vm457_vm7, %v1983_v36 }
 0x8b3   :  { %5549 = vmatprep.mubr.msk.f32.mxu0 %vm193_vm5, %v6453_v59  ;;  %5793 = vmatpush3.bf16.msra.mxu0 %v5790_v3 }
 0x8b4   :  { %5795 = vmatprep.subr.bf16.mxu0 %v5794_v6 }
 0x8b7   :  { %5797 = vmatpush3.bf16.msra.mxu0 %v5794_v6 }
 0x97f   :  { %v2202_v62 = vpop.f32.mrb[24].mxu1 }
 0x980   :  { %v5530_v39 = vpop.f32.mrb[25].mxu1  ;;  %v2129_v40 = vpop.f32.mrb[24].mxu0 }
 0x981   :  { %v2203_v41 = vadd.f32 %v2202_v62, %v2129_v40  ;;  %v5525_v42 = vpop.f32.mrb[25].mxu0 }
 0x984   :  { %v2349_v43 = vpop.f32.mrb[26].mxu1 }
 0x985   :  { %v2275_v44 = vpop.f32.mrb[26].mxu0  ;;  %v5540_v45 = vpop.f32.mrb[27].mxu1 }
 0x986   :  { %v2279_v46 = vadd.f32 %v2275_v44, %v2203_v41  ;;  %v5535_v49 = vpop.f32.mrb[27].mxu0  ;;  %v5129_v41 = vld [vmem:[%s6837_s4 + $0x28] sm:$0xff] }
 0x987   :  { %v5141_v44 = vld [vmem:[%s6839_s6 + $0x28] sm:$0xff]  ;;  %v5131_v49 = vld [vmem:[%s6837_s4 + $0x38] sm:$0xff] }
 0x988   :  { %v2353_v52 = vadd.f32 %v2349_v43, %v2279_v46  ;;  %v5140_v43 = vld [vmem:[%s6839_s6 + $0x20] sm:$0xff]  ;;  %v5130_v46 = vld [vmem:[%s6837_s4 + $0x30] sm:$0xff] }
 0x989   :  { %v5830_v45 = vpack.c.bf16 %v5141_v44, %v5140_v43 }
 0x98a   :  { %v2355_v53 = vadd.f32 %v2353_v52, %v6221_v48  ;;  %v2488_v48 = vld [vmem:[%s6844_s11] sm:$0xff]  ;;  %v5142_v52 = vld [vmem:[%s6839_s6 + $0x30] sm:$0xff] }
 0x98b   :  { %v5798_v54 = vpack.c.bf16 %v2489_v7, %v2488_v48  ;;  %v5122_v48 = vld [vmem:[%s6845_s12] ss:$0 sm:$0xff] }
 0x98c   :  { %v2361_v56 = vsel %vm193_vm5, %v2355_v53, 0.0 }
 0x98d   :  { %2362 = vadd.xlane.f32.xlu1 %v2361_v56  ;;  %5799 = vmatprep.subr.bf16.mxu1 %v5798_v54  ;;  %v5143_v56 = vld [vmem:[%s6839_s6 + $0x38] sm:$0xff] }
 0x98e   :  { %5801 = vmatpush3.bf16.msra.mxu1 %v5798_v54 }
 0x98f   :  { %5803 = vmatprep.subr.bf16.mxu1 %v5802_v50 }
 0x992   :  { %5805 = vmatpush3.bf16.msra.mxu1 %v5802_v50 }
 0x993   :  { %5807 = vmatprep.subr.bf16.mxu1 %v5806_v12 }
 0x996   :  { %5809 = vmatpush3.bf16.msra.mxu1 %v5806_v12  ;;  %v5137_v12 = vld [vmem:[%s6838_s5 + $0x38] sm:$0xff] }
 0x997   :  { %5811 = vmatprep.subr.bf16.mxu1 %v5810_v22 }
 0x99a   :  { %5813 = vmatpush3.bf16.msra.mxu1 %v5810_v22 }
 0x99b   :  { %5831 = vmatprep.subr.bf16.mxu1 %v5830_v45 }
 0xa1a   :  { %v2363_v57 = vpop.xlane.xlu1 %2362 }
 0xa1b   :  { %v2366_v60 = vmul.f32 0.03125, %v2363_v57  ;;  %v5834_v57 = vpack.c.bf16 %v5143_v56, %v5142_v52 }
 0xa1d   :  { %v2368_v61 = vsub.f32 %v2355_v53, %v2366_v60  ;;  %v5818_v53 = vpack.c.bf16 %v5131_v49, %v5130_v46  ;;  %v5134_v60 = vld [vmem:[%s6838_s5 + $0x20] sm:$0xff] }
 0xa1f   :  { %v2370_v63 = vmul.f32 %v2368_v61, %v2368_v61 }
 0xa21   :  { %v2374_v0 = vsel %vm193_vm5, %v2370_v63, 0.0 }
 0xa22   :  { %2375 = vadd.xlane.f32.xlu0 %v2374_v0 }
 0xaaf   :  { %v2376_v47 = vpop.xlane.xlu0 %2375 }
 0xab0   :  { %v2378_v51 = vmul.f32 0.03125, %v2376_v47 }
 0xab2   :  { %v2380_v13 = vadd.f32 1e-05, %v2378_v51 }
 0xab4   :  { %5908 = vrsqrt.f32 %v2380_v13  ;;  %v5826_v13 = vpack.c.bf16 %v5137_v12, %v5136_v11 }
 0xabe   :  { %v5909_v16 = vpop.eup %5908 }
 0xabf   :  { %v2384_v17 = vmul.f32 %v5909_v16, %v2368_v61  ;;  %v5135_v61 = vld [vmem:[%s6838_s5 + $0x28] sm:$0xff] }
 0xac0   :  { %v5822_v63 = vpack.c.bf16 %v5135_v61, %v5134_v60 }
 0xac1   :  { %v2392_v18 = vmul.f32 %v6438_v26, %v2384_v17 }
 0xac3   :  { %v2400_v19 = vadd.f32 %v5117_v34, %v2392_v18 }
 0xac5   :  { %5550 = vmatmul.mubr.msk.f32.vlgmr.msra.gmra.mrb[28].mxu0 %vm193_vm5, %v2400_v19 }
 0xb98   :  { %v5551_v23 = vpop.f32.mrb[28].mxu0 }
 0xb99   :  { %v2477_v58 = vpop.f32.mrb[29].mxu0  ;;  %v2487_v55 = vmax.f32 %v5551_v23, 0.0 }
 0xb9a   :  { %v2486_v24 = vmax.f32 %v2477_v58, 0.0 }
 0xb9c   :  { %5568 = vmatprep.mubr.msk.f32.mxu1 %vm2496_vm10, %v2486_v24 }
 0xb9d   :  { %5569 = vmatmul.mubr.msk.f32.vlgmr.msra.gmra.mrb[28].mxu1 %vm2496_vm10, %v2487_v55 }
 0xb9e   :  { %5833 = vmatpush3.bf16.msra.mxu1 %v5830_v45 }
 0xb9f   :  { %5835 = vmatprep.subr.bf16.mxu1 %v5834_v57 }
 0xba2   :  { %5837 = vmatpush3.bf16.msra.mxu1 %v5834_v57 }
 0xba3   :  { %5609 = vmatprep.subr.mxu1 %v6031_v29 }
 0xc70   :  { %v5570_v25 = vpop.f32.mrb[28].mxu1 }
 0xc71   :  { %v2575_v26 = vadd.f32 %v5570_v25, %v2400_v19  ;;  %v2569_v27 = vpop.f32.mrb[29].mxu1 }
 0xc72   :  { %v2570_v28 = vadd.f32 %v2569_v27, %v6453_v59  ;;  %v5128_v59 = vld [vmem:[%s6837_s4 + $0x20] sm:$0xff] }
 0xc73   :  { %v2583_v30 = vsel %vm193_vm5, %v2575_v26, 0.0  ;;  %v5814_v42 = vpack.c.bf16 %v5129_v41, %v5128_v59 }
 0xc74   :  { %2584 = vadd.xlane.f32.xlu0 %v2583_v30  ;;  %v2580_v31 = vsel %vm193_vm5, %v2570_v28, 0.0 }
 0xc75   :  { %2581 = vadd.xlane.f32.xlu1 %v2580_v31  ;;  %5815 = vmatprep.subr.bf16.mxu0 %v5814_v42 }
 0xc76   :  { %5817 = vmatpush3.bf16.msra.mxu0 %v5814_v42 }
 0xc77   :  { %5819 = vmatprep.subr.bf16.mxu0 %v5818_v53 }
 0xc7a   :  { %5821 = vmatpush3.bf16.msra.mxu0 %v5818_v53 }
 0xc7b   :  { %5823 = vmatprep.subr.bf16.mxu0 %v5822_v63 }
 0xd01   :  { %v2585_v32 = vpop.xlane.xlu0 %2584 }
 0xd02   :  { %v2587_v33 = vmul.f32 0.03125, %v2585_v32  ;;  %v2582_v34 = vpop.xlane.xlu1 %2581 }
 0xd03   :  { %v2586_v35 = vmul.f32 0.03125, %v2582_v34 }
 0xd04   :  { %v2589_v36 = vsub.f32 %v2575_v26, %v2587_v33 }
 0xd05   :  { %v2588_v37 = vsub.f32 %v2570_v28, %v2586_v35 }
 0xd06   :  { %v2591_v38 = vmul.f32 %v2589_v36, %v2589_v36 }
 0xd07   :  { %v2590_v62 = vmul.f32 %v2588_v37, %v2588_v37 }
 0xd08   :  { %v2595_v39 = vsel %vm193_vm5, %v2591_v38, 0.0 }
 0xd09   :  { %2596 = vadd.xlane.f32.xlu0 %v2595_v39  ;;  %v2592_v40 = vsel %vm193_vm5, %v2590_v62, 0.0 }
 0xd0a   :  { %2593 = vadd.xlane.f32.xlu1 %v2592_v40 }
 0xd96   :  { %v2597_v0 = vpop.xlane.xlu0 %2596 }
 0xd97   :  { %v2599_v1 = vmul.f32 0.03125, %v2597_v0  ;;  %v2594_v2 = vpop.xlane.xlu1 %2593 }
 0xd98   :  { %v2598_v3 = vmul.f32 0.03125, %v2594_v2 }
 0xd99   :  { %v2601_v4 = vadd.f32 1e-05, %v2599_v1 }
 0xd9a   :  { %v2600_v5 = vadd.f32 1e-05, %v2598_v3 }
 0xd9b   :  { %5910 = vrsqrt.f32 %v2601_v4 }
 0xd9c   :  { %5912 = vrsqrt.f32 %v2600_v5 }
 0xda5   :  { %v5911_v6 = vpop.eup %5910 }
 0xda6   :  { %v5913_v7 = vpop.eup %5912  ;;  %v2605_v8 = vmul.f32 %v5911_v6, %v2589_v36 }
 0xda7   :  { %v2604_v54 = vmul.f32 %v5913_v7, %v2588_v37 }
 0xda8   :  { %v2613_v50 = vmul.f32 %v5122_v48, %v2605_v8 }
 0xda9   :  { %v2612_v10 = vmul.f32 %v5122_v48, %v2604_v54 }
 0xdaa   :  { %v6539_v51 = vadd.f32 %v5123_v9, %v2613_v50 }
 0xdab   :  { %v6537_v47 = vadd.f32 %v5123_v9, %v2612_v10 }
 0xdad   :  { %5579 = vmatprep.mubr.msk.f32.mxu0 %vm193_vm5, %v6537_v47  ;;  %5601 = vmatprep.mubr.msk.f32.mxu1 %vm193_vm5, %v6537_v47 }
 0xdae   :  { %5580 = vmatmul.mubr.msk.f32.vlgmr.msra.gmra.mrb[30].mxu0 %vm193_vm5, %v6539_v51  ;;  %5602 = vmatmul.mubr.msk.f32.vlgmr.msra.gmra.mrb[30].mxu1 %vm193_vm5, %v6539_v51 }
 0xdaf   :  { %5825 = vmatpush3.bf16.msra.mxu0 %v5822_v63  ;;  %5590 = vmatprep.mubr.msk.f32.mxu0 %vm193_vm5, %v6537_v47 }
 0xdb0   :  { %5827 = vmatprep.subr.bf16.mxu0 %v5826_v13  ;;  %5611 = vmatprep.mubr.msk.f32.mxu1 %vm6032_vm6, %v6031_v29 }
 0xdb3   :  { %5829 = vmatpush3.bf16.msra.mxu0 %v5826_v13 }
 0xdb4   :  { %5604 = vmatprep.subr.mxu0 %v6031_v29 }
 0xdb6   :  { %5591 = vmatmul.mubr.msk.f32.vlgmr.msra.gmra.mrb[32].mxu0 %vm193_vm5, %v6539_v51 }
 0xdb7   :  { %5606 = vmatprep.mubr.msk.f32.mxu0 %vm6032_vm6, %v6031_v29 }
 0xe81   :  { %v6558_v16 = vpop.f32.mrb[30].mxu0  ;;  %v6560_v17 = vpop.f32.mrb[30].mxu1 }
 0xe82   :  { %v2704_v18 = vpop.f32.mrb[31].mxu0  ;;  %v6562_v19 = vpop.f32.mrb[31].mxu1 }
 0xe83   :  { %2874 = vrot.lane.b32.xlu0 %v2704_v18, %s6034_s29 }
 0xe87   :  { %2876 = vrot.lane.b32.xlu0 %v2704_v18, %s6033_s28 }
 0xe89   :  { %v6566_v20 = vpop.f32.mrb[32].mxu0 }
 0xe8a   :  { %v2784_v21 = vpop.f32.mrb[33].mxu0 }
 0xe8b   :  { %2881 = vrot.lane.b32.xlu1 %v2784_v21, %s6034_s29  ;;  %5605 = vmatpush3.xpose.msk.msra.mxu0 %vm457_vm7, %v2784_v21 }
 0xe8c   :  { %5614 = vmatprep.subr.mxu0 %v6031_v29 }
 0xe8e   :  { %5607 = vmatmul.mubr.msk.f32.vlgmr.msra.gmra.mrb[34].mxu0 %vm457_vm7, %v2704_v18 }
 0xe8f   :  { %2883 = vrot.lane.b32.xlu1 %v2784_v21, %s6033_s28  ;;  %5616 = vmatprep.mubr.msk.f32.mxu0 %vm6032_vm6, %v6031_v29 }
 0xe93   :  { %2885 = vrot.lane.b32.xlu1 %v2784_v21, %s6035_s15 }
 0xe97   :  { %2878 = vrot.lane.b32.xlu1 %v2704_v18, %s6035_s15 }
 0xef5   :  { %v2875_v23 = vpop.permute.xlu0 %2874 }
 0xef9   :  { %v2877_v24 = vpop.permute.xlu0 %2876 }
 0xefd   :  { %v2882_v22 = vpop.permute.xlu1 %2881 }
 0xefe   :  { %5610 = vmatpush3.xpose.msk.msra.mxu1 %vm457_vm7, %v2882_v22 }
 0xeff   :  { %5619 = vmatprep.subr.mxu1 %v6031_v29 }
 0xf01   :  { %5612 = vmatmul.mubr.msk.f32.vlgmr.msra.gmra.mrb[32].mxu1 %vm457_vm7, %v2875_v23  ;;  %v2884_v58 = vpop.permute.xlu1 %2883  ;;  %v6650_v23 = vld [vmem:[%s6840_s7 + $0x20] sm:$0xff] }
 0xf02   :  { %5615 = vmatpush3.xpose.msk.msra.mxu0 %vm457_vm7, %v2884_v58  ;;  %5621 = vmatprep.mubr.msk.f32.mxu1 %vm6032_vm6, %v6031_v29  ;;  %v6660_v58 = vld [vmem:[%s6840_s7 + $0x38] sm:$0xff] }
 0xf03   :  { %5624 = vmatprep.subr.mxu0 %v6031_v29 }
 0xf05   :  { %v2886_v55 = vpop.permute.xlu1 %2885  ;;  %5617 = vmatmul.mubr.msk.f32.vlgmr.msra.gmra.mrb[36].mxu0 %vm457_vm7, %v2877_v24 }
 0xf06   :  { %5620 = vmatpush3.xpose.msk.msra.mxu1 %vm457_vm7, %v2886_v55  ;;  %5625 = vmatpush3.msra.mxu0 %v6562_v19 }
 0xf07   :  { %5629 = vmatprep.subr.mxu1 %v6031_v29  ;;  %5626 = vmatprep.mubr.msk.f32.mxu0 %vm6032_vm6, %v6031_v29 }
 0xf08   :  { %5634 = vmatprep.subr.mxu0 %v6031_v29 }
 0xf09   :  { %v2879_v25 = vpop.permute.xlu1 %2878 }
 0xf0a   :  { %5622 = vmatmul.mubr.msk.f32.vlgmr.msra.gmra.mrb[34].mxu1 %vm457_vm7, %v2879_v25  ;;  %v6670_v25 = vld [vmem:[%s6840_s7 + $0x30] sm:$0xff] }
 0xf0b   :  { %5631 = vmatprep.mubr.msk.f32.mxu1 %vm6032_vm6, %v6031_v29 }
 0xf61   :  { %v2967_v26 = vpop.f32.mrb[34].mxu0 }
 0xf62   :  { %v3193_v27 = vsel %vm760_vm8, -1e+09, %v2967_v26  ;;  %v5608_v28 = vpop.f32.mrb[35].mxu0 }
 0xf63   :  { %v3197_v30 = vsel %vm457_vm7, %v3193_v27, -inf }
 0xf64   :  { %3198 = vmax.xlane.f32.xlu0 %v3197_v30 }
 0xfd4   :  { %v3041_v31 = vpop.f32.mrb[32].mxu1 }
 0xfd5   :  { %v3194_v32 = vsel %vm760_vm8, -1e+09, %v3041_v31  ;;  %v5613_v33 = vpop.f32.mrb[33].mxu1 }
 0xfd6   :  { %v3200_v34 = vsel %vm457_vm7, %v3194_v32, -inf }
 0xfd7   :  { %3201 = vmax.xlane.f32.xlu1 %v3200_v34 }
 0xfd8   :  { %v3115_v35 = vpop.f32.mrb[36].mxu0 }
 0xfd9   :  { %v3195_v36 = vsel %vm760_vm8, -1e+09, %v3115_v35  ;;  %v5618_v37 = vpop.f32.mrb[37].mxu0 }
 0xfda   :  { %v3203_v38 = vsel %vm457_vm7, %v3195_v36, -inf }
 0xfdb   :  { %3204 = vmax.xlane.f32.xlu0 %v3203_v38 }
 0xfdd   :  { %v3189_v62 = vpop.f32.mrb[34].mxu1 }
 0xfde   :  { %v3196_v39 = vsel %vm760_vm8, -1e+09, %v3189_v62  ;;  %v5623_v40 = vpop.f32.mrb[35].mxu1 }
 0xfdf   :  { %v3206_v59 = vsel %vm457_vm7, %v3196_v39, -inf }
 0xfe0   :  { %3207 = vmax.xlane.f32.xlu0 %v3206_v59 }
 0xfe8   :  { %2888 = vrot.lane.b32.xlu1 %v6562_v19, %s6034_s29 }
 0xff1   :  { %v3199_v41 = vpop.xlane.xlu0 %3198 }
 0xff2   :  { %v3209_v42 = vsub.f32 %v3193_v27, %v3199_v41 }
 0xff4   :  { %v3213_v43 = vmul.f32 1.442695, %v3209_v42 }
 0xff6   :  { %5914 = vpow2.f32 %v3213_v43 }
0x1000   :  { %v5915_v44 = vpop.eup %5914 }
0x1001   :  { %v3221_v45 = vsel %vm457_vm7, %v5915_v44, 0.0 }
0x100c   :  { %3222 = vadd.xlane.f32.xlu1 %v3221_v45 }
0x1064   :  { %v3202_v46 = vpop.xlane.xlu1 %3201 }
0x1065   :  { %v3210_v49 = vsub.f32 %v3194_v32, %v3202_v46 }
0x1067   :  { %v3215_v52 = vmul.f32 1.442695, %v3210_v49 }
0x1068   :  { %v2889_v14 = vpop.permute.xlu1 %2888  ;;  %v3205_v53 = vpop.xlane.xlu0 %3204 }
0x1069   :  { %5916 = vpow2.f32 %v3215_v52  ;;  %v3211_v56 = vsub.f32 %v3195_v36, %v3205_v53  ;;  %5630 = vmatpush3.msra.mxu1 %v2889_v14 }
0x106a   :  { %5639 = vmatprep.subr.mxu1 %v6031_v29 }
0x106b   :  { %v3217_v57 = vmul.f32 1.442695, %v3211_v56 }
0x106d   :  { %5918 = vpow2.f32 %v3217_v57  ;;  %v3208_v60 = vpop.xlane.xlu0 %3207 }
0x106e   :  { %v3212_v61 = vsub.f32 %v3196_v39, %v3208_v60 }
0x1070   :  { %v3219_v63 = vmul.f32 1.442695, %v3212_v61 }
0x1072   :  { %5920 = vpow2.f32 %v3219_v63 }
0x1073   :  { %v5917_v0 = vpop.eup %5916 }
0x1074   :  { %v3224_v1 = vsel %vm457_vm7, %v5917_v0, 0.0 }
0x1075   :  { %3225 = vadd.xlane.f32.xlu0 %v3224_v1 }
0x1077   :  { %v5919_v2 = vpop.eup %5918 }
0x1078   :  { %v3227_v3 = vsel %vm457_vm7, %v5919_v2, 0.0 }
0x1079   :  { %3228 = vadd.xlane.f32.xlu1 %v3227_v3 }
0x107c   :  { %v5921_v4 = vpop.eup %5920 }
0x107d   :  { %v3230_v5 = vsel %vm457_vm7, %v5921_v4, 0.0 }
0x107e   :  { %3231 = vadd.xlane.f32.xlu0 %v3230_v5 }
0x108a   :  { %2894 = vrot.lane.b32.xlu1 %v6562_v19, %s6035_s15 }
0x108e   :  { %3835 = vrot.lane.b32.xlu1 %v6566_v20, %s6034_s29 }
0x1092   :  { %3837 = vrot.lane.b32.xlu1 %v6566_v20, %s6033_s28 }
0x1094   :  { %2891 = vrot.lane.b32.xlu0 %v6562_v19, %s6033_s28  ;;  %v6640_v19 = vld [vmem:[%s6840_s7 + $0x28] sm:$0xff]  ;;  %s5998_s7 = scalar_lea.vmem %s5061_s26, 256 }
0x1095   :  { %p5999_p2 = scmp.ne.s32.totalorder %s5061_s26, %s5998_s7  ;;  %p6004_p4 = scmp.lt.s32.totalorder %s5998_s7, %s5998_s7 }
0x1096   :  { %3830 = vrot.lane.b32.xlu1 %v6558_v16, %s6033_s28 }
0x1097   :  { %p6005_p5 = por %p6004_p4, %p6003_p3 }
0x1098   :  { %3828 = vrot.lane.b32.xlu0 %v6558_v16, %s6034_s29 }
0x1099   :  { %v3223_v6 = vpop.xlane.xlu1 %3222  ;;  %p6006_p6 = pnand %p6005_p5, %p5999_p2 }
0x109a   :  { %5922 = vrcp.f32 %v3223_v6 }
0x109c   :  { %3839 = vrot.lane.b32.xlu0 %v6566_v20, %s6035_s15 }
0x10a0   :  { %3832 = vrot.lane.b32.xlu0 %v6558_v16, %s6035_s15 }
0x10a4   :  { %v5923_v48 = vpop.eup %5922 }
0x10a5   :  { %v3237_v7 = vmul.f32 %v5923_v48, %v5915_v44 }
0x10a7   :  { %5627 = vmatmul.mubr.msk.f32.vlgmr.msra.gmra.mrb[38].mxu0 %vm457_vm7, %v3237_v7 }
0x10a8   :  { %5636 = vmatprep.mubr.msk.f32.mxu0 %vm6032_vm6, %v6031_v29 }
0x1102   :  { %v3226_v8 = vpop.xlane.xlu0 %3225 }
0x1103   :  { %5924 = vrcp.f32 %v3226_v8 }
0x1106   :  { %v3229_v54 = vpop.xlane.xlu1 %3228 }
0x1107   :  { %5926 = vrcp.f32 %v3229_v54 }
0x110a   :  { %v2895_v12 = vpop.permute.xlu1 %2894 }
0x110b   :  { %v3232_v9 = vpop.xlane.xlu0 %3231 }
0x110c   :  { %5928 = vrcp.f32 %v3232_v9 }
0x110d   :  { %v5925_v50 = vpop.eup %5924 }
0x110e   :  { %v3238_v10 = vmul.f32 %v5925_v50, %v5917_v0  ;;  %v3836_v28 = vpop.permute.xlu1 %3835 }
0x110f   :  { %v2892_v11 = vpop.permute.xlu0 %2891 }
0x1110   :  { %5632 = vmatmul.mubr.msk.f32.vlgmr.msra.gmra.mrb[36].mxu1 %vm457_vm7, %v3238_v10  ;;  %5635 = vmatpush3.msra.mxu0 %v2892_v11 }
0x1111   :  { %v5927_v13 = vpop.eup %5926  ;;  %5640 = vmatpush3.msra.mxu1 %v2895_v12  ;;  %5641 = vmatprep.mubr.msk.f32.mxu1 %vm6032_vm6, %v6031_v29 }
0x1112   :  { %v3239_v18 = vmul.f32 %v5927_v13, %v5919_v2  ;;  %5649 = vmatprep.subr.mxu1 %v6031_v29  ;;  %5644 = vmatprep.subr.mxu0 %v6031_v29  ;;  %v3838_v33 = vpop.permute.xlu1 %3837 }
0x1113   :  { %v3829_v31 = vpop.permute.xlu0 %3828 }
0x1114   :  { %5637 = vmatmul.mubr.msk.f32.vlgmr.msra.gmra.mrb[40].mxu0 %vm457_vm7, %v3239_v18 }
0x1115   :  { %5645 = vmatpush3.msra.mxu0 %v6640_v19  ;;  %5646 = vmatprep.mubr.msk.f32.mxu0 %vm6032_vm6, %v6031_v29 }
0x1116   :  { %v5929_v21 = vpop.eup %5928  ;;  %5654 = vmatprep.subr.mxu0 %v6031_v29 }
0x1117   :  { %v3240_v22 = vmul.f32 %v5929_v21, %v5921_v4  ;;  %v3840_v36 = vpop.permute.xlu0 %3839 }
0x1119   :  { %5642 = vmatmul.mubr.msk.f32.vlgmr.msra.gmra.mrb[38].mxu1 %vm457_vm7, %v3240_v22 }
0x111a   :  { %5650 = vmatpush3.msra.mxu1 %v6650_v23  ;;  %5651 = vmatprep.mubr.msk.f32.mxu1 %vm6032_vm6, %v6031_v29 }
0x111b   :  { %5659 = vmatprep.subr.mxu1 %v6031_v29 }
0x117a   :  { %v3310_v24 = vpop.f32.mrb[38].mxu0 }
0x117b   :  { %v5628_v55 = vpop.f32.mrb[39].mxu0  ;;  %5652 = vmatmul.mubr.msk.f32.vlgmr.msra.gmra.mrb[40].mxu1 %vm457_vm7, %v3310_v24 }
0x117c   :  { %5660 = vmatpush3.msra.mxu1 %v6660_v58  ;;  %5661 = vmatprep.mubr.msk.f32.mxu1 %vm6032_vm6, %v6031_v29 }
0x117d   :  { %5669 = vmatprep.subr.mxu1 %v6031_v29 }
0x11e3   :  { %v3383_v26 = vpop.f32.mrb[36].mxu1 }
0x11e4   :  { %v5633_v27 = vpop.f32.mrb[37].mxu1  ;;  %5647 = vmatmul.mubr.msk.f32.vlgmr.msra.gmra.mrb[42].mxu0 %vm457_vm7, %v3383_v26 }
0x11e5   :  { %5655 = vmatpush3.msra.mxu0 %v6670_v25  ;;  %5656 = vmatprep.mubr.msk.f32.mxu0 %vm6032_vm6, %v6031_v29 }
0x11e6   :  { %5664 = vmatprep.subr.mxu0 %v6031_v29 }
0x11e7   :  { %v3456_v30 = vpop.f32.mrb[40].mxu0 }
0x11e8   :  { %v5638_v32 = vpop.f32.mrb[41].mxu0  ;;  %5657 = vmatmul.mubr.msk.f32.vlgmr.msra.gmra.mrb[44].mxu0 %vm457_vm7, %v3456_v30 }
0x11e9   :  { %5666 = vmatprep.mubr.msk.f32.mxu0 %vm6032_vm6, %v6031_v29 }
0x11ec   :  { %5665 = vmatpush3.xpose.msk.msra.mxu0 %vm457_vm7, %v6566_v20  ;;  %v3529_v34 = vpop.f32.mrb[38].mxu1  ;;  %v3831_v20 = vpop.permute.xlu1 %3830 }
0x11ed   :  { %v5643_v35 = vpop.f32.mrb[39].mxu1  ;;  %5662 = vmatmul.mubr.msk.f32.vlgmr.msra.gmra.mrb[42].mxu1 %vm457_vm7, %v3529_v34  ;;  %5674 = vmatprep.subr.mxu0 %v6031_v29 }
0x11ee   :  { %5670 = vmatpush3.xpose.msk.msra.mxu1 %vm457_vm7, %v3836_v28  ;;  %5671 = vmatprep.mubr.msk.f32.mxu1 %vm6032_vm6, %v6031_v29 }
0x11ef   :  { %5667 = vmatmul.mubr.msk.f32.vlgmr.msra.gmra.mrb[46].mxu0 %vm457_vm7, %v6558_v16  ;;  %5679 = vmatprep.subr.mxu1 %v6031_v29  ;;  %v3833_v16 = vpop.permute.xlu0 %3832 }
0x11f0   :  { %5675 = vmatpush3.xpose.msk.msra.mxu0 %vm457_vm7, %v3838_v33  ;;  %5676 = vmatprep.mubr.msk.f32.mxu0 %vm6032_vm6, %v6031_v29 }
0x11f1   :  { %5672 = vmatmul.mubr.msk.f32.vlgmr.msra.gmra.mrb[44].mxu1 %vm457_vm7, %v3829_v31  ;;  %5684 = vmatprep.subr.mxu0 %v6031_v29 }
0x11f2   :  { %5680 = vmatpush3.xpose.msk.msra.mxu1 %vm457_vm7, %v3840_v36  ;;  %5681 = vmatprep.mubr.msk.f32.mxu1 %vm6032_vm6, %v6031_v29 }
0x11f3   :  { %5677 = vmatmul.mubr.msk.f32.vlgmr.msra.gmra.mrb[48].mxu0 %vm457_vm7, %v3831_v20  ;;  %5689 = vmatprep.subr.mxu1 %v6031_v29 }
0x11f4   :  { %5685 = vmatpush3.msra.mxu0 %v6560_v17  ;;  %5686 = vmatprep.mubr.msk.f32.mxu0 %vm6032_vm6, %v6031_v29 }
0x11f5   :  { %5682 = vmatmul.mubr.msk.f32.vlgmr.msra.gmra.mrb[46].mxu1 %vm457_vm7, %v3833_v16  ;;  %5694 = vmatprep.subr.mxu0 %v6031_v29 }
0x11f6   :  { %5691 = vmatprep.mubr.msk.f32.mxu1 %vm6032_vm6, %v6031_v29 }
0x124e   :  { %v3675_v37 = vpop.f32.mrb[40].mxu1 }
0x124f   :  { %v5653_v38 = vpop.f32.mrb[41].mxu1 }
0x12b7   :  { %v3602_v62 = vpop.f32.mrb[42].mxu0 }
0x12b8   :  { %v3676_v39 = vadd.f32 %v3675_v37, %v3602_v62  ;;  %v5648_v40 = vpop.f32.mrb[43].mxu0 }
0x12bb   :  { %v3748_v59 = vpop.f32.mrb[44].mxu0 }
0x12bc   :  { %v3752_v41 = vadd.f32 %v3748_v59, %v3676_v39  ;;  %v5658_v42 = vpop.f32.mrb[45].mxu0 }
0x12c0   :  { %v3822_v43 = vpop.f32.mrb[42].mxu1 }
0x12c1   :  { %v3826_v44 = vadd.f32 %v3822_v43, %v3752_v41  ;;  %v5663_v45 = vpop.f32.mrb[43].mxu1 }
0x12c2   :  { %v3921_v46 = vpop.f32.mrb[46].mxu0 }
0x12c3   :  { %v4147_v49 = vsel %vm1719_vm9, -1e+09, %v3921_v46  ;;  %v5668_v52 = vpop.f32.mrb[47].mxu0  ;;  %v4781_v30 = vadd.f32 %v3826_v44, %v6537_v47 }
0x12c4   :  { %v3995_v14 = vpop.f32.mrb[44].mxu1  ;;  %v4151_v53 = vsel %vm457_vm7, %v4147_v49, -inf }
0x12c5   :  { %v4148_v56 = vsel %vm1719_vm9, -1e+09, %v3995_v14  ;;  %4152 = vmax.xlane.f32.xlu1 %v4151_v53  ;;  %v5673_v57 = vpop.f32.mrb[45].mxu1  ;;  %v4787_v31 = vsel %vm193_vm5, %v4781_v30, 0.0  ;;  %v6754_v14 = vld [vmem:[%s6841_s8 + $0x1] ss:$0 sm:$0xff] }
0x12c6   :  { %v4069_v60 = vpop.f32.mrb[48].mxu0  ;;  %v4154_v61 = vsel %vm457_vm7, %v4148_v56, -inf }
0x12c7   :  { %v4149_v63 = vsel %vm1719_vm9, -1e+09, %v4069_v60  ;;  %v5678_v0 = vpop.f32.mrb[49].mxu0  ;;  %4155 = vmax.xlane.f32.xlu0 %v4154_v61 }
0x12c8   :  { %v4143_v1 = vpop.f32.mrb[46].mxu1  ;;  %v4157_v5 = vsel %vm457_vm7, %v4149_v63, -inf }
0x12c9   :  { %v4150_v2 = vsel %vm1719_vm9, -1e+09, %v4143_v1  ;;  %v5683_v3 = vpop.f32.mrb[47].mxu1 }
0x12ca   :  { %v4160_v4 = vsel %vm457_vm7, %v4150_v2, -inf }
0x12cb   :  { %4161 = vmax.xlane.f32.xlu1 %v4160_v4  ;;  %4158 = vmax.xlane.f32.xlu0 %v4157_v5 }
0x1352   :  { %v4153_v6 = vpop.xlane.xlu1 %4152 }
0x1353   :  { %v4163_v48 = vsub.f32 %v4147_v49, %v4153_v6 }
0x1354   :  { %v4156_v7 = vpop.xlane.xlu0 %4155 }
0x1355   :  { %v4167_v8 = vmul.f32 1.442695, %v4163_v48  ;;  %v4164_v54 = vsub.f32 %v4148_v56, %v4156_v7 }
0x1357   :  { %5930 = vpow2.f32 %v4167_v8  ;;  %v4169_v9 = vmul.f32 1.442695, %v4164_v54 }
0x1358   :  { %v4162_v50 = vpop.xlane.xlu1 %4161  ;;  %v4159_v10 = vpop.xlane.xlu0 %4158 }
0x1359   :  { %5932 = vpow2.f32 %v4169_v9  ;;  %v4166_v11 = vsub.f32 %v4150_v2, %v4162_v50  ;;  %v4165_v15 = vsub.f32 %v4149_v63, %v4159_v10  ;;  %v5181_v63 = vld [vmem:[%s6842_s9 + $0x1] ss:$0 sm:$0xff] }
0x135b   :  { %v4173_v12 = vmul.f32 1.442695, %v4166_v11  ;;  %v4171_v13 = vmul.f32 1.442695, %v4165_v15 }
0x135d   :  { %5934 = vpow2.f32 %v4173_v12 }
0x135e   :  { %5936 = vpow2.f32 %v4171_v13 }
0x1361   :  { %v5931_v18 = vpop.eup %5930 }
0x1362   :  { %v4175_v21 = vsel %vm457_vm7, %v5931_v18, 0.0 }
0x1363   :  { %v5933_v22 = vpop.eup %5932  ;;  %4176 = vadd.xlane.f32.xlu0 %v4175_v21 }
0x1364   :  { %v4178_v24 = vsel %vm457_vm7, %v5933_v22, 0.0 }
0x1365   :  { %4179 = vadd.xlane.f32.xlu1 %v4178_v24  ;;  %v4831_v24 = vld [vmem:[#allocation5 + $0x28] sm:$0xff] }
0x1367   :  { %v5935_v55 = vpop.eup %5934 }
0x1368   :  { %v5937_v26 = vpop.eup %5936  ;;  %v4184_v27 = vsel %vm457_vm7, %v5935_v55, 0.0 }
0x1369   :  { %4185 = vadd.xlane.f32.xlu1 %v4184_v27  ;;  %v4181_v28 = vsel %vm457_vm7, %v5937_v26, 0.0  ;;  %v4833_v27 = vld [vmem:[#allocation5 + $0x38] sm:$0xff] }
0x136a   :  { %4182 = vadd.xlane.f32.xlu0 %v4181_v28 }
0x137a   :  { %3845 = vrot.lane.b32.xlu1 %v6560_v17, %s6033_s28 }
0x137e   :  { %3848 = vrot.lane.b32.xlu1 %v6560_v17, %s6035_s15 }
0x1380   :  { %3842 = vrot.lane.b32.xlu0 %v6560_v17, %s6034_s29 }
0x139f   :  { %4788 = vadd.xlane.f32.xlu0 %v4787_v31  ;;  %v5186_v31 = vld [vmem:[%s6844_s11 + $0x50] sm:$0xff] }
0x13f0   :  { %v4177_v32 = vpop.xlane.xlu0 %4176 }
0x13f1   :  { %5938 = vrcp.f32 %v4177_v32 }
0x13f2   :  { %v4180_v33 = vpop.xlane.xlu1 %4179 }
0x13f3   :  { %5940 = vrcp.f32 %v4180_v33  ;;  %v5187_v33 = vld [vmem:[%s6844_s11 + $0x58] sm:$0xff] }
0x13f6   :  { %v4186_v34 = vpop.xlane.xlu1 %4185 }
0x13f7   :  { %5942 = vrcp.f32 %v4186_v34  ;;  %v4183_v35 = vpop.xlane.xlu0 %4182  ;;  %v5850_v34 = vpack.c.bf16 %v5187_v33, %v5186_v31 }
0x13f8   :  { %5944 = vrcp.f32 %v4183_v35  ;;  %v5188_v35 = vld [vmem:[%s6844_s11 + $0x60] sm:$0xff] }
0x13fa   :  { %v3846_v36 = vpop.permute.xlu1 %3845 }
0x13fb   :  { %v5939_v20 = vpop.eup %5938  ;;  %v3843_v16 = vpop.permute.xlu0 %3842 }
0x13fc   :  { %v4191_v37 = vmul.f32 %v5939_v20, %v5931_v18  ;;  %5690 = vmatpush3.msra.mxu1 %v3843_v16 }
0x13fd   :  { %v5941_v38 = vpop.eup %5940  ;;  %5699 = vmatprep.subr.mxu1 %v6031_v29 }
0x13fe   :  { %v4192_v47 = vmul.f32 %v5941_v38, %v5933_v22  ;;  %5687 = vmatmul.mubr.msk.f32.vlgmr.msra.gmra.mrb[50].mxu0 %vm457_vm7, %v4191_v37  ;;  %v3849_v17 = vpop.permute.xlu1 %3848  ;;  %v4830_v22 = vld [vmem:[#allocation5 + $0x20] sm:$0xff] }
0x13ff   :  { %5695 = vmatpush3.msra.mxu0 %v3846_v36  ;;  %5696 = vmatprep.mubr.msk.f32.mxu0 %vm6032_vm6, %v6031_v29  ;;  %v5189_v36 = vld [vmem:[%s6844_s11 + $0x68] sm:$0xff] }
0x1400   :  { %5692 = vmatmul.mubr.msk.f32.vlgmr.msra.gmra.mrb[48].mxu1 %vm457_vm7, %v4192_v47  ;;  %5704 = vmatprep.subr.mxu0 %v6031_v29  ;;  %v5854_v20 = vpack.c.bf16 %v5189_v36, %v5188_v35 }
0x1401   :  { %v5943_v62 = vpop.eup %5942  ;;  %5700 = vmatpush3.msra.mxu1 %v3849_v17  ;;  %5701 = vmatprep.mubr.msk.f32.mxu1 %vm6032_vm6, %v6031_v29 }
0x1402   :  { %v5945_v39 = vpop.eup %5944  ;;  %v4194_v40 = vmul.f32 %v5943_v62, %v5935_v55  ;;  %5709 = vmatprep.subr.mxu1 %v6031_v29  ;;  %v5838_v55 = vpack.c.bf16 %v4831_v24, %v4830_v22 }
0x1403   :  { %v4193_v59 = vmul.f32 %v5945_v39, %v5937_v26  ;;  %v4832_v26 = vld [vmem:[#allocation5 + $0x30] sm:$0xff] }
0x1404   :  { %5702 = vmatmul.mubr.msk.f32.vlgmr.msra.gmra.mrb[50].mxu1 %vm457_vm7, %v4194_v40  ;;  %v5842_v28 = vpack.c.bf16 %v4833_v27, %v4832_v26  ;;  %v5190_v40 = vld [vmem:[%s6844_s11 + $0x70] sm:$0xff] }
0x1405   :  { %5697 = vmatmul.mubr.msk.f32.vlgmr.msra.gmra.mrb[52].mxu0 %vm457_vm7, %v4193_v59  ;;  %5710 = vmatpush3.msra.mxu1 %v6650_v23  ;;  %v5191_v59 = vld [vmem:[%s6844_s11 + $0x78] sm:$0xff] }
0x1406   :  { %5705 = vmatpush3.msra.mxu0 %v6640_v19  ;;  %5711 = vmatprep.mubr.msk.f32.mxu1 %vm6032_vm6, %v6031_v29 }
0x1407   :  { %5706 = vmatprep.mubr.msk.f32.mxu0 %vm6032_vm6, %v6031_v29  ;;  %5714 = vmatprep.subr.mxu0 %v6031_v29 }
0x1408   :  { %5719 = vmatprep.subr.mxu1 %v6031_v29 }
0x142c   :  { %v4789_v41 = vpop.xlane.xlu0 %4788 }
0x142d   :  { %v4793_v42 = vmul.f32 0.03125, %v4789_v41  ;;  %v5858_v41 = vpack.c.bf16 %v5191_v59, %v5190_v40 }
0x142f   :  { %v4795_v43 = vsub.f32 %v4781_v30, %v4793_v42  ;;  %v5185_v30 = vld [vmem:[%s6844_s11 + $0x48] sm:$0xff] }
0x1431   :  { %v4797_v44 = vmul.f32 %v4795_v43, %v4795_v43 }
0x1433   :  { %v4799_v45 = vsel %vm193_vm5, %v4797_v44, 0.0 }
0x1434   :  { %4800 = vadd.xlane.f32.xlu0 %v4799_v45 }
0x14c1   :  { %v4801_v23 = vpop.xlane.xlu0 %4800 }
0x14c2   :  { %v4805_v46 = vmul.f32 0.03125, %v4801_v23 }
0x14c4   :  { %v4807_v19 = vadd.f32 1e-05, %v4805_v46 }
0x14c6   :  { %5946 = vrsqrt.f32 %v4807_v19 }
0x14d0   :  { %v5947_v49 = vpop.eup %5946 }
0x14d1   :  { %v4264_v52 = vpop.f32.mrb[50].mxu0  ;;  %v4811_v53 = vmul.f32 %v5947_v49, %v4795_v43 }
0x14d2   :  { %v5688_v56 = vpop.f32.mrb[51].mxu0  ;;  %5712 = vmatmul.mubr.msk.f32.vlgmr.msra.gmra.mrb[52].mxu1 %vm457_vm7, %v4264_v52 }
0x14d3   :  { %v4337_v57 = vpop.f32.mrb[48].mxu1  ;;  %5720 = vmatpush3.msra.mxu1 %v6660_v58  ;;  %5721 = vmatprep.mubr.msk.f32.mxu1 %vm6032_vm6, %v6031_v29  ;;  %v4819_v61 = vmul.f32 %v6754_v14, %v4811_v53 }
0x14d4   :  { %v5693_v60 = vpop.f32.mrb[49].mxu1  ;;  %5707 = vmatmul.mubr.msk.f32.vlgmr.msra.gmra.mrb[54].mxu0 %vm457_vm7, %v4337_v57 }
0x14d5   :  { %5715 = vmatpush3.msra.mxu0 %v6670_v25  ;;  %5716 = vmatprep.mubr.msk.f32.mxu0 %vm6032_vm6, %v6031_v29  ;;  %v6769_v2 = vadd.f32 %v5181_v63, %v4819_v61 }
0x14d6   :  { %5839 = vmatprep.subr.bf16.mxu0 %v5838_v55 }
0x14d7   :  { %v4483_v0 = vpop.f32.mrb[50].mxu1 }
0x14d8   :  { %v4410_v1 = vpop.f32.mrb[52].mxu0  ;;  %v5703_v58 = vpop.f32.mrb[51].mxu1  ;;  %5722 = vmatmul.mubr.msk.f32.vlgmr.msra.gmra.mrb[54].mxu1 %vm457_vm7, %v4483_v0 }
0x14d9   :  { %v5698_v3 = vpop.f32.mrb[53].mxu0  ;;  %5717 = vmatmul.mubr.msk.f32.vlgmr.msra.gmra.mrb[56].mxu0 %vm457_vm7, %v4410_v1 }
0x14da   :  { %5732 = vmatprep.mubr.msk.f32.mxu0 %vm193_vm5, %v6769_v2  ;;  %5841 = vmatpush3.bf16.msra.mxu0 %v5838_v55 }
0x14db   :  { %5843 = vmatprep.subr.bf16.mxu0 %v5842_v28 }
0x14de   :  { %5845 = vmatpush3.bf16.msra.mxu0 %v5842_v28 }
0x15a5   :  { %v4629_v25 = vpop.f32.mrb[52].mxu1 }
0x15a6   :  { %v5713_v4 = vpop.f32.mrb[53].mxu1 }
0x15a7   :  { %v4556_v29 = vpop.f32.mrb[54].mxu0 }
0x15a8   :  { %v4630_v5 = vadd.f32 %v4629_v25, %v4556_v29  ;;  %v5708_v6 = vpop.f32.mrb[55].mxu0 }
0x15ab   :  { %v4776_v48 = vpop.f32.mrb[54].mxu1 }
0x15ac   :  { %v4702_v7 = vpop.f32.mrb[56].mxu0  ;;  %v5723_v8 = vpop.f32.mrb[55].mxu1 }
0x15ad   :  { %v4706_v54 = vadd.f32 %v4702_v7, %v4630_v5  ;;  %v5718_v9 = vpop.f32.mrb[57].mxu0  ;;  %v5196_v7 = vld [vmem:[%s6845_s12 + $0x1] ss:$0 sm:$0xff] }
0x15af   :  { %v4780_v50 = vadd.f32 %v4776_v48, %v4706_v54 }
0x15b1   :  { %v4782_v10 = vadd.f32 %v4780_v50, %v6539_v51  ;;  %v5184_v51 = vld [vmem:[%s6844_s11 + $0x40] sm:$0xff] }
0x15b2   :  { %v5846_v32 = vpack.c.bf16 %v5185_v30, %v5184_v51  ;;  %v5197_v50 = vld [vmem:[%s6846_s13 + $0x1] ss:$0 sm:$0xff] }
0x15b3   :  { %v4790_v11 = vsel %vm193_vm5, %v4782_v10, 0.0 }
0x15b4   :  { %4791 = vadd.xlane.f32.xlu1 %v4790_v11  ;;  %5847 = vmatprep.subr.bf16.mxu1 %v5846_v32 }
0x15b5   :  { %5849 = vmatpush3.bf16.msra.mxu1 %v5846_v32 }
0x15b6   :  { %5851 = vmatprep.subr.bf16.mxu1 %v5850_v34 }
0x15b9   :  { %5853 = vmatpush3.bf16.msra.mxu1 %v5850_v34 }
0x15ba   :  { %5855 = vmatprep.subr.bf16.mxu1 %v5854_v20 }
0x15bd   :  { %5857 = vmatpush3.bf16.msra.mxu1 %v5854_v20 }
0x15be   :  { %5859 = vmatprep.subr.bf16.mxu1 %v5858_v41 }
0x15c1   :  { %5861 = vmatpush3.bf16.msra.mxu1 %v5858_v41 }
0x1641   :  { %v4792_v15 = vpop.xlane.xlu1 %4791 }
0x1642   :  { %v4794_v12 = vmul.f32 0.03125, %v4792_v15 }
0x1644   :  { %v4796_v13 = vsub.f32 %v4782_v10, %v4794_v12 }
0x1646   :  { %v4798_v18 = vmul.f32 %v4796_v13, %v4796_v13 }
0x1648   :  { %v4802_v21 = vsel %vm193_vm5, %v4798_v18, 0.0 }
0x1649   :  { %4803 = vadd.xlane.f32.xlu0 %v4802_v21 }
0x16d6   :  { %v4804_v16 = vpop.xlane.xlu0 %4803 }
0x16d7   :  { %v4806_v37 = vmul.f32 0.03125, %v4804_v16 }
0x16d9   :  { %v4808_v38 = vadd.f32 1e-05, %v4806_v37 }
0x16db   :  { %5948 = vrsqrt.f32 %v4808_v38 }
0x16e5   :  { %v5949_v47 = vpop.eup %5948 }
0x16e6   :  { %v4812_v17 = vmul.f32 %v5949_v47, %v4796_v13 }
0x16e8   :  { %v4820_v62 = vmul.f32 %v6754_v14, %v4812_v17 }
0x16ea   :  { %v4828_v39 = vadd.f32 %v5181_v63, %v4820_v62 }
0x16ec   :  { %5733 = vmatmul.mubr.msk.f32.vlgmr.msra.gmra.mrb[58].mxu0 %vm193_vm5, %v4828_v39 }
0x17bf   :  { %v5734_v42 = vpop.f32.mrb[58].mxu0 }
0x17c0   :  { %v4906_v43 = vpop.f32.mrb[59].mxu0  ;;  %v4916_v45 = vmax.f32 %v5734_v42, 0.0 }
0x17c1   :  { %v4915_v44 = vmax.f32 %v4906_v43, 0.0 }
0x17c3   :  { %5751 = vmatprep.mubr.msk.f32.mxu1 %vm2496_vm10, %v4915_v44 }
0x17c4   :  { %5752 = vmatmul.mubr.msk.f32.vlgmr.msra.gmra.mrb[56].mxu1 %vm2496_vm10, %v4916_v45 }
0x1897   :  { %v5753_v23 = vpop.f32.mrb[56].mxu1 }
0x1898   :  { %v5004_v46 = vadd.f32 %v5753_v23, %v4828_v39  ;;  %v4998_v19 = vpop.f32.mrb[57].mxu1 }
0x1899   :  { %v4999_v49 = vadd.f32 %v4998_v19, %v6769_v2 }
0x189a   :  { %v5014_v52 = vsel %vm193_vm5, %v5004_v46, 0.0 }
0x189b   :  { %5015 = vadd.xlane.f32.xlu0 %v5014_v52  ;;  %v5011_v14 = vsel %vm193_vm5, %v4999_v49, 0.0 }
0x189c   :  { %5012 = vadd.xlane.f32.xlu1 %v5011_v14 }
0x1928   :  { %v5016_v53 = vpop.xlane.xlu0 %5015 }
0x1929   :  { %v5018_v56 = vmul.f32 0.03125, %v5016_v53  ;;  %v5013_v57 = vpop.xlane.xlu1 %5012 }
0x192a   :  { %v5017_v60 = vmul.f32 0.03125, %v5013_v57 }
0x192b   :  { %v5020_v61 = vsub.f32 %v5004_v46, %v5018_v56 }
0x192c   :  { %v5019_v63 = vsub.f32 %v4999_v49, %v5017_v60 }
0x192d   :  { %v5022_v0 = vmul.f32 %v5020_v61, %v5020_v61 }
0x192e   :  { %v5021_v1 = vmul.f32 %v5019_v63, %v5019_v63 }
0x192f   :  { %v5026_v58 = vsel %vm193_vm5, %v5022_v0, 0.0 }
0x1930   :  { %5027 = vadd.xlane.f32.xlu0 %v5026_v58  ;;  %v5023_v3 = vsel %vm193_vm5, %v5021_v1, 0.0 }
0x1931   :  { %5024 = vadd.xlane.f32.xlu1 %v5023_v3 }
0x19bd   :  { %v5028_v2 = vpop.xlane.xlu0 %5027 }
0x19be   :  { %v5030_v25 = vmul.f32 0.03125, %v5028_v2  ;;  %v5025_v4 = vpop.xlane.xlu1 %5024 }
0x19bf   :  { %v5029_v29 = vmul.f32 0.03125, %v5025_v4 }
0x19c0   :  { %v5032_v5 = vadd.f32 1e-05, %v5030_v25 }
0x19c1   :  { %v5031_v6 = vadd.f32 1e-05, %v5029_v29 }
0x19c2   :  { %5950 = vrsqrt.f32 %v5032_v5 }
0x19c3   :  { %5952 = vrsqrt.f32 %v5031_v6 }
0x19cc   :  { %v5951_v48 = vpop.eup %5950 }
0x19cd   :  { %v5953_v8 = vpop.eup %5952  ;;  %v5036_v54 = vmul.f32 %v5951_v48, %v5020_v61 }
0x19ce   :  { %v5035_v9 = vmul.f32 %v5953_v8, %v5019_v63 }
0x19cf   :  { %v5044_v10 = vmul.f32 %v5196_v7, %v5036_v54 }
0x19d0   :  { %v5043_v11 = vmul.f32 %v5196_v7, %v5035_v9 }
0x19d1   :  { %v5052_v15 = vadd.f32 %v5197_v50, %v5044_v10 }
0x19d2   :  { %v5051_v12 = vadd.f32 %v5197_v50, %v5043_v11 }
0x19d3   :  { %5054 = vst.msk [vmem:[#allocation7 + $0x8] sm:$0xff] %vm193_vm5, %v5052_v15 }
0x19d4   :  { %5053 = vst.msk [vmem:[#allocation7] sm:$0xff] %vm193_vm5, %v5051_v12 }
0x19d5   :  { %6009 = shalt.err (!%p6006_p6)
}
0x19d6   :  { %s6010_s28 = scalar_lea.hbm %s6847_s14, 256 }
0x19d7   :  { %p6011_p7 = scmp.ne.s32.totalorder %s6847_s14, %s6010_s28  ;;  %p6014_p8 = scmp.lt.u32.totalorder %s6010_s28, %s6847_s14 }
0x19d9   :  { %p6016_p9 = pnand %p6014_p8, %p6011_p7 }
0x19db   :  { %6019 = shalt.err (!%p6016_p9)
}
0x19dc   :  { %5066 = dma.vmem_to_hbm [thread:$0]  %s5061_s26, 256, %s6847_s14, [#allocation4], %s6028_s3, %s6028_s3, %s6029_s30  }
0x19dd   :  { %6024 = dma.done.wait [#allocation4], 256  }
0x19de   :  { %6025 = vsyncadd [#allocation4], 4294967040 }
0x19df   :  { %5070 = vsyncpa [#allocation3], 1 }
0x19e0   :  { %5071 = vsyncpa [#allocation6], 1 }
0x19e1   :  { %5072 = vsyncpa [#allocation4], 1 }

</bundles_post_ra>
